<compile_context>
chip_gen: v7x
topology: tpu7x:2x2x1
jax: 0.10.0
libtpu: 0.0.40
codegen_flags: <defaults>
</compile_context>

<pallas_src>
import jax
import jax.numpy as jnp
from jax.experimental import pallas as pl
from jax.experimental.pallas import tpu as pltpu

HIDDEN = 128   # conv1 out_channels
LANE = 128     # TPU lane width: node axis padded to a multiple of this
TB = 8         # batch-tile (sublane) rows processed per grid step


def hypergraph_net_kernel(pt_ref, x_ref, w1_ref, b1_ref, w2_ref, b2_ref, o_ref):
    """Fused 2-layer hypergraph network, nodes on the lane axis, batched.

    pt_ref : (Npad, Npad) bf16   P^T, P = diag(Dv^-1) H diag(Be^-1) H^T (VMEM, resident)
    x_ref  : (TB, Npad)   f32    batch tile of input node features (in_channels = 1)
    w1_ref : (1, HIDDEN)  f32    conv1 weight, lane-dense row
    b1_ref : (1, HIDDEN)  f32    conv1 bias, lane-dense row
    w2_ref : (1, HIDDEN)  f32    conv2 weight, lane-dense row
    b2_ref : (1, 1)       f32    conv2 bias scalar (SMEM)
    o_ref  : (TB, Npad)   f32    batch tile of output node features
    """
    pt = pt_ref[...]                                                   # bf16 (Npad, Npad)

    # ---- conv1 aggregation: Z = X @ P^T  (full MXU matmul, f32 accumulate) ----
    z = jnp.dot(x_ref[...].astype(jnp.bfloat16), pt,
                preferred_element_type=jnp.float32)                    # (TB, Npad)

    # ---- hidden layer (rank-1 in the feature dim since in_channels == 1) ----
    # hidden[b, v, h] = relu(w1[h] * z[b, v] + b1[h]);  conv2's feature matmul
    # (· w2) is folded into the same pass and contracted over H on the lane axis.
    a = jnp.maximum(z[:, :, None] * w1_ref[...] + b1_ref[...], 0.0)    # (TB, Npad, H) f32
    v = jnp.sum(a * w2_ref[...], axis=-1)                              # (TB, Npad)    f32

    # ---- conv2 aggregation + bias: out = V @ P^T + b2 ----
    o_ref[...] = jnp.dot(v.astype(jnp.bfloat16), pt,
                         preferred_element_type=jnp.float32) + b2_ref[0, 0]


def build_propagation(hyperedge_index, num_nodes, num_edges):
    """One-time graph preprocessing (graph is static).

    Densifies hyperedge_index into H [N, E], builds P = diag(D^-1) H diag(B^-1) H^T,
    zero-pads the node axis to a multiple of 128 lanes and returns P^T in bf16
    (the only graph operand the kernel needs) plus (H, Dinv, Binv) for the
    plain-JAX reference check.
    """
    node_idx = hyperedge_index[0]
    edge_idx = hyperedge_index[1]
    H = jnp.zeros((num_nodes, num_edges), jnp.float32).at[node_idx, edge_idx].add(1.0)
    D = jnp.sum(H, axis=1, keepdims=True)               # node degree      (N, 1)
    Dinv = jnp.where(D > 0, 1.0 / D, 0.0)
    B = jnp.sum(H, axis=0, keepdims=True)                # hyperedge size   (1, E)
    Binv = jnp.where(B > 0, 1.0 / B, 0.0)
    P = (Dinv * H * Binv) @ H.T                          # (N, N)

    n_pad = int(pl.cdiv(num_nodes, LANE)) * LANE
    PT = jnp.zeros((n_pad, n_pad), jnp.float32).at[:num_nodes, :num_nodes].set(P.T)
    return PT.astype(jnp.bfloat16), (H, Dinv, Binv.T)


def prepare_params(params):
    """Re-layout tiny parameters once: lane-dense rows + SMEM scalar."""
    w1, b1, w2, b2 = params          # (1,H), (1,H), (H,1), (1,1)
    return w1, b1, w2.T, b2          # (1,H), (1,H), (1,H), (1,1)


def hypergraph_net_forward(x_rows, pt, kparams):
    """Batched forward: x_rows is (B, N) stacked inputs (nodes on lanes).

    Returns (B, N) outputs in the same layout; each row is an independent
    evaluation of the original module (per-sample semantics preserved).
    """
    w1r, b1r, w2r, b2 = kparams
    bsz, n = x_rows.shape
    n_pad = pt.shape[0]
    b_pad = int(pl.cdiv(bsz, TB)) * TB

    xp = jnp.zeros((b_pad, n_pad), jnp.float32).at[:bsz, :n].set(x_rows)

    out = pl.pallas_call(
        hypergraph_net_kernel,
        out_shape=jax.ShapeDtypeStruct((b_pad, n_pad), jnp.float32),
        grid_spec=pltpu.PrefetchScalarGridSpec(
            num_scalar_prefetch=0,
            grid=(b_pad // TB,),
            in_specs=[
                # P^T: constant block index -> fetched once, VMEM-resident.
                pl.BlockSpec((n_pad, n_pad), lambda b: (0, 0)),
                pl.BlockSpec((TB, n_pad), lambda b: (b, 0)),
                pl.BlockSpec((1, HIDDEN), lambda b: (0, 0)),
                pl.BlockSpec((1, HIDDEN), lambda b: (0, 0)),
                pl.BlockSpec((1, HIDDEN), lambda b: (0, 0)),
                pl.BlockSpec((1, 1), lambda b: (0, 0),
                             memory_space=pltpu.MemorySpace.SMEM),
            ],
            out_specs=pl.BlockSpec((TB, n_pad), lambda b: (b, 0)),
        ),
        compiler_params=pltpu.CompilerParams(
            dimension_semantics=("parallel",),        # batch tiles are independent
            vmem_limit_bytes=32 * 1024 * 1024,        # keep P^T resident as N grows
        ),
    )(pt, xp, w1r, b1r, w2r, b2)

    return out[:bsz, :n]


def reference_forward(x, H, Dinv, Binv, params):
    """Plain-JAX reference of the original (unrewritten) PyG math, one sample."""
    w1, b1, w2, b2 = params

    def conv(f, w, b):
        y = f @ w
        m = (H.T @ y) * Binv
        z = (H @ m) * Dinv
        return z + b

    a = jnp.maximum(conv(x, w1, b1), 0.0)
    return conv(a, w2, b2)


def glorot(key, shape):
    fan_in, fan_out = shape
    limit = (6.0 / (fan_in + fan_out)) ** 0.5
    return jax.random.uniform(key, shape, jnp.float32, -limit, limit)


if __name__ == "__main__":
    N = 64             # number of nodes
    E = 16             # number of hyperedges
    NODES_PER_EDGE = 4
    BATCH = 8          # independent input feature vectors evaluated per call

    key = jax.random.PRNGKey(0)
    k_nodes, k_x, k_w1, k_w2 = jax.random.split(key, 4)

    # Synthetic hypergraph: 4 (possibly repeated) node slots per hyperedge.
    node_idx = jax.random.randint(k_nodes, (E * NODES_PER_EDGE,), 0, N)
    edge_idx = jnp.repeat(jnp.arange(E, dtype=jnp.int32), NODES_PER_EDGE)
    hyperedge_index = jnp.stack([node_idx, edge_idx]).astype(jnp.int32)   # [2, nnz]

    # Batch of module inputs (each sample is the module's (N, 1) feature vector).
    x_batch = jax.random.normal(k_x, (BATCH, N, 1), jnp.float32)

    # Parameters (PyG: glorot weights, zero bias).
    w1 = glorot(k_w1, (1, HIDDEN))
    b1 = jnp.zeros((1, HIDDEN), jnp.float32)
    w2 = glorot(k_w2, (HIDDEN, 1))
    b2 = jnp.zeros((1, 1), jnp.float32)
    params = (w1, b1, w2, b2)

    # One-time preprocessing (graph, params, and input layout are hoisted).
    pt, (H, Dinv, Binv) = build_propagation(hyperedge_index, N, E)
    kparams = prepare_params(params)
    x_rows = x_batch[:, :, 0]                       # (B, N), nodes on lanes

    out_rows = hypergraph_net_forward(x_rows, pt, kparams)
    out_rows = jax.block_until_ready(out_rows)

    # Per-sample reference check (bf16 P^T / LHS -> relaxed tolerance).
    ref_rows = jnp.stack(
        [reference_forward(x_batch[b], H, Dinv, Binv, params)[:, 0]
         for b in range(BATCH)])
    if not jnp.allclose(out_rows, ref_rows, atol=5e-2, rtol=5e-2):
        max_err = jnp.max(jnp.abs(out_rows - ref_rows))
        raise AssertionError(f"Pallas kernel disagrees with reference (max err {max_err})")

    print("KERNEL_OK")
</pallas_src>

<mosaic_0001>
module attributes {stable_mosaic.version = 11 : i64} {
  func.func @hypergraph_net_kernel(%arg0: i32, %arg1: memref<128x128xbf16, #tpu.memory_space<vmem>>, %arg2: memref<8x128xf32, #tpu.memory_space<vmem>>, %arg3: memref<1x128xf32, #tpu.memory_space<vmem>>, %arg4: memref<1x128xf32, #tpu.memory_space<vmem>>, %arg5: memref<1x128xf32, #tpu.memory_space<vmem>>, %arg6: memref<1x1xf32, #tpu.memory_space<smem>>, %arg7: memref<8x128xf32, #tpu.memory_space<vmem>>) attributes {dimension_semantics = [#tpu.dimension_semantics<parallel>], iteration_bounds = array<i64: 1>, scalar_prefetch = 0 : i64, scratch_operands = 0 : i64, tpu.core_type = #tpu.core_type<tc>, window_params = [{pipeline_mode = #tpu.pipeline_mode<synchronous>, transform_indices = @transform_0, window_bounds = array<i64: 128, 128>}, {transform_indices = @transform_1, window_bounds = array<i64: 8, 128>}, {pipeline_mode = #tpu.pipeline_mode<synchronous>, transform_indices = @transform_2, window_bounds = array<i64: 1, 128>}, {pipeline_mode = #tpu.pipeline_mode<synchronous>, transform_indices = @transform_3, window_bounds = array<i64: 1, 128>}, {pipeline_mode = #tpu.pipeline_mode<synchronous>, transform_indices = @transform_4, window_bounds = array<i64: 1, 128>}, {transform_indices = @transform_5, window_bounds = array<i64: 1, 1>}, {transform_indices = @transform_6, window_bounds = array<i64: 8, 128>}]} {
    %c0 = arith.constant 0 : index
    %c0_0 = arith.constant 0 : index
    %0 = vector.load %arg1[%c0, %c0_0] : memref<128x128xbf16, #tpu.memory_space<vmem>>, vector<128x128xbf16>
    %c0_1 = arith.constant 0 : index
    %c0_2 = arith.constant 0 : index
    %1 = vector.load %arg2[%c0_1, %c0_2] : memref<8x128xf32, #tpu.memory_space<vmem>>, vector<8x128xf32>
    %2 = arith.truncf %1 : vector<8x128xf32> to vector<8x128xbf16>
    %cst = arith.constant dense<0.000000e+00> : vector<8x128xf32>
    %3 = tpu.matmul %2, %0, %cst {dimension_numbers = #tpu.dot_dimension_numbers<[1], [0], [0], [1], [0, 0, 1, 1], [], []>} : vector<8x128xbf16>, vector<128x128xbf16>, vector<8x128xf32> -> vector<8x128xf32>
    %4 = vector.shape_cast %3 : vector<8x128xf32> to vector<8x128x1xf32>
    %c0_3 = arith.constant 0 : index
    %c0_4 = arith.constant 0 : index
    %5 = vector.load %arg3[%c0_3, %c0_4] : memref<1x128xf32, #tpu.memory_space<vmem>>, vector<1x128xf32>
    %6 = vector.shape_cast %5 : vector<1x128xf32> to vector<1x1x128xf32>
    %7 = vector.broadcast %4 : vector<8x128x1xf32> to vector<8x128x128xf32>
    %8 = vector.broadcast %6 : vector<1x1x128xf32> to vector<8x128x128xf32>
    %9 = arith.mulf %7, %8 : vector<8x128x128xf32>
    %c0_5 = arith.constant 0 : index
    %c0_6 = arith.constant 0 : index
    %10 = vector.load %arg4[%c0_5, %c0_6] : memref<1x128xf32, #tpu.memory_space<vmem>>, vector<1x128xf32>
    %11 = vector.shape_cast %10 : vector<1x128xf32> to vector<1x1x128xf32>
    %12 = vector.broadcast %11 : vector<1x1x128xf32> to vector<8x128x128xf32>
    %13 = arith.addf %9, %12 : vector<8x128x128xf32>
    %cst_7 = arith.constant 0.000000e+00 : f32
    %14 = vector.broadcast %cst_7 : f32 to vector<8x128x128xf32>
    %15 = arith.maximumf %13, %14 : vector<8x128x128xf32>
    %c0_8 = arith.constant 0 : index
    %c0_9 = arith.constant 0 : index
    %16 = vector.load %arg5[%c0_8, %c0_9] : memref<1x128xf32, #tpu.memory_space<vmem>>, vector<1x128xf32>
    %17 = vector.shape_cast %16 : vector<1x128xf32> to vector<1x1x128xf32>
    %18 = vector.broadcast %17 : vector<1x1x128xf32> to vector<8x128x128xf32>
    %19 = arith.mulf %15, %18 : vector<8x128x128xf32>
    %cst_10 = arith.constant dense<0.000000e+00> : vector<8x128xf32>
    %20 = vector.multi_reduction <add>, %19, %cst_10 [2] : vector<8x128x128xf32> to vector<8x128xf32>
    %21 = arith.truncf %20 : vector<8x128xf32> to vector<8x128xbf16>
    %cst_11 = arith.constant dense<0.000000e+00> : vector<8x128xf32>
    %22 = tpu.matmul %21, %0, %cst_11 {dimension_numbers = #tpu.dot_dimension_numbers<[1], [0], [0], [1], [0, 0, 1, 1], [], []>} : vector<8x128xbf16>, vector<128x128xbf16>, vector<8x128xf32> -> vector<8x128xf32>
    %c0_12 = arith.constant 0 : index
    %c0_13 = arith.constant 0 : index
    %23 = memref.load %arg6[%c0_12, %c0_13] : memref<1x1xf32, #tpu.memory_space<smem>>
    %24 = vector.broadcast %23 : f32 to vector<8x128xf32>
    %25 = arith.addf %22, %24 : vector<8x128xf32>
    %c0_14 = arith.constant 0 : index
    %c0_15 = arith.constant 0 : index
    %26 = vector.load %arg7[%c0_14, %c0_15] : memref<8x128xf32, #tpu.memory_space<vmem>>, vector<8x128xf32>
    tpu.vector_store %arg7[%c0_14, %c0_15], %25 {strides = array<i32>} : memref<8x128xf32, #tpu.memory_space<vmem>>, vector<8x128xf32>,
    return
  }
  func.func @transform_0(%arg0: i32) -> (i32, i32) {
    %c0_i32 = arith.constant 0 : i32
    %c0_i32_0 = arith.constant 0 : i32
    %c0_i32_1 = arith.constant 0 : i32
    return %c0_i32, %c0_i32_0 : i32, i32
  }
  func.func @transform_1(%arg0: i32) -> (i32, i32) {
    %c0_i32 = arith.constant 0 : i32
    %c0_i32_0 = arith.constant 0 : i32
    return %arg0, %c0_i32 : i32, i32
  }
  func.func @transform_2(%arg0: i32) -> (i32, i32) {
    %c0_i32 = arith.constant 0 : i32
    %c0_i32_0 = arith.constant 0 : i32
    %c0_i32_1 = arith.constant 0 : i32
    return %c0_i32, %c0_i32_0 : i32, i32
  }
  func.func @transform_3(%arg0: i32) -> (i32, i32) {
    %c0_i32 = arith.constant 0 : i32
    %c0_i32_0 = arith.constant 0 : i32
    %c0_i32_1 = arith.constant 0 : i32
    return %c0_i32, %c0_i32_0 : i32, i32
  }
  func.func @transform_4(%arg0: i32) -> (i32, i32) {
    %c0_i32 = arith.constant 0 : i32
    %c0_i32_0 = arith.constant 0 : i32
    %c0_i32_1 = arith.constant 0 : i32
    return %c0_i32, %c0_i32_0 : i32, i32
  }
  func.func @transform_5(%arg0: i32) -> (i32, i32) {
    %c0_i32 = arith.constant 0 : i32
    %c0_i32_0 = arith.constant 0 : i32
    %c0_i32_1 = arith.constant 0 : i32
    return %c0_i32, %c0_i32_0 : i32, i32
  }
  func.func @transform_6(%arg0: i32) -> (i32, i32) {
    %c0_i32 = arith.constant 0 : i32
    %c0_i32_0 = arith.constant 0 : i32
    return %arg0, %c0_i32 : i32, i32
  }
}

</mosaic_0001>

<bundles_post_ra>
// kernel: tpu_custom_call.1
= control target key start
LH: loop header
LB: loop body
LE: loop exit
PB: predicated region body
PF: predicated region fallthrough
CT: control target
= control target key end

     0   :  { %12 = vsyncpa [#allocation4], 0  ;;  %s4070_s0 = inlined_call_operand.hbm [shape: bf16[128,128], index: 0, kind: input, shape index: {}]   ;;  %s4071_s1 = inlined_call_operand.hbm [shape: f32[8,128], index: 1, kind: input, shape index: {}]   ;;  %s4072_s2 = inlined_call_operand.vmem [shape: f32[1,128], index: 2, kind: input, shape index: {}]   ;;  %s4073_s3 = inlined_call_operand.vmem [shape: f32[1,128], index: 3, kind: input, shape index: {}]   ;;  %s4074_s4 = inlined_call_operand.vmem [shape: f32[1,128], index: 4, kind: input, shape index: {}]   ;;  %s4075_s5 = inlined_call_operand.<no memory space> [shape: f32[1,1], index: 5, kind: input, shape index: {}]   ;;  %s4076_s6 = inlined_call_operand.hbm [shape: f32[8,128], index: 6, kind: output, shape index: {}]  }
   0x1   :  { %13 = vsyncpa [#allocation7], 0 }
   0x2   :  { %14 = vsyncpa [#allocation5], 0  ;;  %s2637_s21 = smov [#allocation3]   ;;  %s2565_s25 = scalar_lea.hbm %s4070_s0, 1024 }
   0x3   :  { %s20_s22 = sshll.u32 %s2637_s21, 4  ;;  %p2566_p0 = scmp.ne.s32.totalorder %s4070_s0, %s2565_s25  ;;  %s21_s22 = int_to_ptr.vmem [resolvable:$true] %s20_s22 }
   0x4   :  { %p2569_p1 = scmp.lt.u32.totalorder %s2565_s25, %s4070_s0 }
   0x6   :  { %p2571_p2 = pnand %p2569_p1, %p2566_p0 }
   0x8   :  { %2574 = shalt.err (!%p2571_p2)
}
   0x9   :  { %s2575_s30 = scalar_lea.vmem %s21_s22, 1024  ;;  %p2580_p4 = scmp.lt.s32.totalorder %s21_s22, %s21_s22 }
   0xa   :  { %p2576_p3 = scmp.ne.s32.totalorder %s21_s22, %s2575_s30  ;;  %p2581_p5 = scmp.lt.s32.totalorder %s2575_s30, %s2575_s30 }
   0xc   :  { %p2582_p6 = por %p2581_p5, %p2580_p4 }
   0xe   :  { %p2583_p7 = pnand %p2582_p6, %p2576_p3 }
  0x10   :  { %2586 = shalt.err (!%p2583_p7)
}
  0x11   :  { %s2638_s7 = smov 64   ;;  %s2639_s8 = smov 4  }
  0x12   :  { %26 = dma.hbm_to_vmem [thread:$0]  %s4070_s0, 1024, %s21_s22, [#allocation4], %s2638_s7, %s2638_s7, %s2639_s8  }
  0x13   :  { %s2640_s11 = smov [#allocation6]   ;;  %s2587_s15 = scalar_lea.hbm %s4071_s1, 128 }
  0x14   :  { %s33_s12 = sshll.u32 %s2640_s11, 4  ;;  %p2588_p8 = scmp.ne.s32.totalorder %s4071_s1, %s2587_s15  ;;  %s34_s12 = int_to_ptr.vmem [resolvable:$true] %s33_s12 }
  0x15   :  { %p2591_p9 = scmp.lt.u32.totalorder %s2587_s15, %s4071_s1 }
  0x17   :  { %p2593_p10 = pnand %p2591_p9, %p2588_p8 }
  0x19   :  { %2596 = shalt.err (!%p2593_p10)
}
  0x1a   :  { %s2597_s20 = scalar_lea.vmem %s34_s12, 128  ;;  %p2602_p12 = scmp.lt.s32.totalorder %s34_s12, %s34_s12 }
  0x1b   :  { %p2598_p11 = scmp.ne.s32.totalorder %s34_s12, %s2597_s20  ;;  %p2603_p13 = scmp.lt.s32.totalorder %s2597_s20, %s2597_s20 }
  0x1d   :  { %p2604_p0 = por %p2603_p13, %p2602_p12 }
  0x1f   :  { %p2605_p1 = pnand %p2604_p0, %p2598_p11 }
  0x21   :  { %2608 = shalt.err (!%p2605_p1)
}
  0x22   :  { %36 = dma.hbm_to_vmem [thread:$0]  %s4071_s1, 128, %s34_s12, [#allocation7]  }
  0x23   :  { %2631 = dma.done.wait [#allocation4], 1024  }
  0x24   :  { %2632 = vsyncadd [#allocation4], 4294966272 }
  0x25   :  { %2633 = dma.done.wait [#allocation7], 128  }
  0x26   :  { %2634 = vsyncadd [#allocation7], 4294967168  ;;  %v2641_v0 = vmov 0.0   ;;  %vm2642_vm0 = vmmov 0   ;;  %v2554_v1 = vld [vmem:[#allocation3] sm:$0xff]   ;;  %v2555_v2 = vld [vmem:[#allocation3 + $0x8] sm:$0xff]   ;;  %v4077_v11 = vlaneseq }
  0x27   :  { %2507 = vmatprep.subr.bf16.mxu0 %v2641_v0  ;;  %2523 = vmatprep.mubr.msk.bf16.mxu0 %vm2642_vm0, %v2641_v0  ;;  %v2556_v3 = vld [vmem:[#allocation3 + $0x10] sm:$0xff]   ;;  %v2557_v4 = vld [vmem:[#allocation3 + $0x18] sm:$0xff]   ;;  %v2558_v5 = vld [vmem:[#allocation3 + $0x20] sm:$0xff]   ;;  %vm1752_vm1 = vcmask 130112   ;;  %vm1759_vm2 = vcmask 195712   ;;  %vm1766_vm3 = vcmask 261312  }
  0x28   :  { %2527 = vmatprep.subr.bf16.mxu1 %v2641_v0  ;;  %2543 = vmatprep.mubr.msk.bf16.mxu1 %vm2642_vm0, %v2641_v0  ;;  %v2559_v6 = vld [vmem:[#allocation3 + $0x28] sm:$0xff]   ;;  %v2560_v7 = vld [vmem:[#allocation3 + $0x30] sm:$0xff]   ;;  %v2561_v8 = vld [vmem:[#allocation3 + $0x38] sm:$0xff]   ;;  %v2704_v12 = vshrl.u32 %v4077_v11, 7  ;;  %vm1773_vm4 = vcmask 326912   ;;  %vm1780_vm5 = vcmask 392512  }
  0x29   :  { %2508 = vmatpush3.bf16.msra.mxu0 %v2554_v1  ;;  %2528 = vmatpush3.bf16.msra.mxu1 %v2554_v1  ;;  %v68_v9 = vld [vmem:[#allocation6] sm:$0xff]  ;;  %vm1787_vm6 = vcmask 458112   ;;  %vm1794_vm7 = vcmask 523712   ;;  %vm1801_vm8 = vcmask 589312   ;;  %vm1808_vm9 = vcmask 654912   ;;  %s2643_s8 = smov [#allocation8]  }
  0x2a   :  { %2509 = vmatprep.subr.bf16.mxu0 %v2641_v0  ;;  %2529 = vmatprep.subr.bf16.mxu1 %v2641_v0  ;;  %v69_v10 = vpack.c.bf16 %v68_v9, %v68_v9  ;;  %4080 = vst [vmem:[#allocation12_spill] sm:$0xff] %v2704_v12  ;;  %v160_v13 = vsub.s32 0, %v2704_v12  ;;  %v227_v19 = vsub.s32 1, %v2704_v12  ;;  %v294_v21 = vsub.s32 2, %v2704_v12  ;;  %s2468_s9 = sshll.u32 %s2643_s8, 4  ;;  %s2469_s9 = int_to_ptr.vmem [resolvable:$true] %s2468_s9 }
  0x2b   :  { %v361_v23 = vsub.s32 3, %v2704_v12  ;;  %v428_v29 = vsub.s32 4, %v2704_v12  ;;  %v495_v41 = vsub.s32 5, %v2704_v12  ;;  %v562_v47 = vsub.s32 6, %v2704_v12  ;;  %s2609_s10 = scalar_lea.vmem %s2469_s9, 128  ;;  %p2614_p3 = scmp.lt.s32.totalorder %s2469_s9, %s2469_s9 }
  0x2c   :  { %v629_v53 = vsub.s32 7, %v2704_v12  ;;  %vm1815_vm10 = vcmask 720512   ;;  %vm1822_vm11 = vcmask 786112   ;;  %vm1829_vm12 = vcmask 851712   ;;  %p2610_p2 = scmp.ne.s32.totalorder %s2469_s9, %s2609_s10  ;;  %p2615_p4 = scmp.lt.s32.totalorder %s2609_s10, %s2609_s10 }
  0x2d   :  { %2510 = vmatpush3.bf16.msra.mxu0 %v2555_v2  ;;  %2530 = vmatpush3.bf16.msra.mxu1 %v2555_v2  ;;  %vm1836_vm13 = vcmask 917312   ;;  %vm1843_vm14 = vcmask 982912   ;;  %vm1850_vm15 = vcmask 1048512   ;;  %vm2405_vm0 = vcmask 1041409  }
  0x2e   :  { %2511 = vmatprep.subr.bf16.mxu0 %v2641_v0  ;;  %2531 = vmatprep.subr.bf16.mxu1 %v2641_v0  ;;  %p2616_p5 = por %p2615_p4, %p2614_p3 }
  0x30   :  { %p2617_p6 = pnand %p2616_p5, %p2610_p2 }
  0x31   :  { %2512 = vmatpush3.bf16.msra.mxu0 %v2556_v3  ;;  %2532 = vmatpush3.bf16.msra.mxu1 %v2556_v3 }
  0x32   :  { %2513 = vmatprep.subr.bf16.mxu0 %v2641_v0  ;;  %2533 = vmatprep.subr.bf16.mxu1 %v2641_v0 }
  0x35   :  { %2514 = vmatpush3.bf16.msra.mxu0 %v2557_v4  ;;  %2534 = vmatpush3.bf16.msra.mxu1 %v2557_v4 }
  0x36   :  { %2515 = vmatprep.subr.bf16.mxu0 %v2641_v0  ;;  %2535 = vmatprep.subr.bf16.mxu1 %v2641_v0 }
  0x39   :  { %2516 = vmatpush3.bf16.msra.mxu0 %v2558_v5  ;;  %2536 = vmatpush3.bf16.msra.mxu1 %v2558_v5 }
  0x3a   :  { %2517 = vmatprep.subr.bf16.mxu0 %v2641_v0  ;;  %2537 = vmatprep.subr.bf16.mxu1 %v2641_v0 }
  0x3d   :  { %2518 = vmatpush3.bf16.msra.mxu0 %v2559_v6  ;;  %2538 = vmatpush3.bf16.msra.mxu1 %v2559_v6 }
  0x3e   :  { %2519 = vmatprep.subr.bf16.mxu0 %v2641_v0  ;;  %2539 = vmatprep.subr.bf16.mxu1 %v2641_v0 }
  0x41   :  { %2520 = vmatpush3.bf16.msra.mxu0 %v2560_v7  ;;  %2540 = vmatpush3.bf16.msra.mxu1 %v2560_v7 }
  0x42   :  { %2521 = vmatprep.subr.bf16.mxu0 %v2641_v0  ;;  %2541 = vmatprep.subr.bf16.mxu1 %v2641_v0 }
  0x45   :  { %2522 = vmatpush3.bf16.msra.mxu0 %v2561_v8  ;;  %2542 = vmatpush3.bf16.msra.mxu1 %v2561_v8 }
  0x48   :  { %2524 = vmatmul.mubr.bf16.vlgmr.msra.gmra.mrb[0].mxu0 %v69_v10 }
 0x11b   :  { %v2707_v14 = vpop.f32.mrb[0].mxu0 }
 0x11c   :  { %v161_v15 = vrot.slane %v2707_v14, %v160_v13  ;;  %v2525_v16 = vpop.f32.mrb[1].mxu0  ;;  %v228_v20 = vrot.slane %v2707_v14, %v227_v19  ;;  %v295_v22 = vrot.slane %v2707_v14, %v294_v21  ;;  %v362_v24 = vrot.slane %v2707_v14, %v361_v23 }
 0x11d   :  { %v155_v17 = vpop.f32.mrb[2].mxu0  ;;  %v2730_v32 = vrot.slane %v2707_v14, %v428_v29  ;;  %v2764_v44 = vrot.slane %v2707_v14, %v495_v41  ;;  %v2780_v50 = vrot.slane %v2707_v14, %v562_v47  ;;  %v2796_v56 = vrot.slane %v2707_v14, %v629_v53 }
 0x11e   :  { %171 = vbcast.lane.b32.xlu1 %v161_v15, 272  ;;  %163 = vbcast.lane.b32.xlu0 %v161_v15, 256  ;;  %v2526_v18 = vpop.f32.mrb[3].mxu0 }
 0x122   :  { %175 = vbcast.lane.b32.xlu1 %v161_v15, 280  ;;  %167 = vbcast.lane.b32.xlu0 %v161_v15, 264 }
 0x126   :  { %183 = vbcast.lane.b32.xlu1 %v161_v15, 296  ;;  %179 = vbcast.lane.b32.xlu0 %v161_v15, 288 }
 0x12a   :  { %191 = vbcast.lane.b32.xlu1 %v161_v15, 312  ;;  %187 = vbcast.lane.b32.xlu0 %v161_v15, 304 }
 0x12e   :  { %199 = vbcast.lane.b32.xlu1 %v161_v15, 328  ;;  %195 = vbcast.lane.b32.xlu0 %v161_v15, 320 }
 0x132   :  { %207 = vbcast.lane.b32.xlu1 %v161_v15, 344  ;;  %203 = vbcast.lane.b32.xlu0 %v161_v15, 336 }
 0x136   :  { %215 = vbcast.lane.b32.xlu1 %v161_v15, 360  ;;  %211 = vbcast.lane.b32.xlu0 %v161_v15, 352 }
 0x13a   :  { %223 = vbcast.lane.b32.xlu1 %v161_v15, 376  ;;  %219 = vbcast.lane.b32.xlu0 %v161_v15, 368 }
 0x13e   :  { %234 = vbcast.lane.b32.xlu1 %v228_v20, 264  ;;  %230 = vbcast.lane.b32.xlu0 %v228_v20, 256 }
 0x142   :  { %242 = vbcast.lane.b32.xlu1 %v228_v20, 280  ;;  %238 = vbcast.lane.b32.xlu0 %v228_v20, 272 }
 0x146   :  { %250 = vbcast.lane.b32.xlu1 %v228_v20, 296  ;;  %246 = vbcast.lane.b32.xlu0 %v228_v20, 288 }
 0x14a   :  { %258 = vbcast.lane.b32.xlu1 %v228_v20, 312  ;;  %254 = vbcast.lane.b32.xlu0 %v228_v20, 304 }
 0x14e   :  { %266 = vbcast.lane.b32.xlu1 %v228_v20, 328  ;;  %262 = vbcast.lane.b32.xlu0 %v228_v20, 320 }
 0x152   :  { %274 = vbcast.lane.b32.xlu1 %v228_v20, 344  ;;  %270 = vbcast.lane.b32.xlu0 %v228_v20, 336 }
 0x156   :  { %282 = vbcast.lane.b32.xlu1 %v228_v20, 360  ;;  %278 = vbcast.lane.b32.xlu0 %v228_v20, 352 }
 0x15a   :  { %290 = vbcast.lane.b32.xlu1 %v228_v20, 376  ;;  %286 = vbcast.lane.b32.xlu0 %v228_v20, 368 }
 0x15e   :  { %301 = vbcast.lane.b32.xlu1 %v295_v22, 264  ;;  %297 = vbcast.lane.b32.xlu0 %v295_v22, 256 }
 0x162   :  { %309 = vbcast.lane.b32.xlu1 %v295_v22, 280  ;;  %305 = vbcast.lane.b32.xlu0 %v295_v22, 272 }
 0x166   :  { %317 = vbcast.lane.b32.xlu1 %v295_v22, 296  ;;  %313 = vbcast.lane.b32.xlu0 %v295_v22, 288 }
 0x16a   :  { %325 = vbcast.lane.b32.xlu1 %v295_v22, 312  ;;  %321 = vbcast.lane.b32.xlu0 %v295_v22, 304 }
 0x16e   :  { %333 = vbcast.lane.b32.xlu1 %v295_v22, 328  ;;  %329 = vbcast.lane.b32.xlu0 %v295_v22, 320 }
 0x172   :  { %341 = vbcast.lane.b32.xlu1 %v295_v22, 344  ;;  %337 = vbcast.lane.b32.xlu0 %v295_v22, 336 }
 0x176   :  { %349 = vbcast.lane.b32.xlu1 %v295_v22, 360  ;;  %345 = vbcast.lane.b32.xlu0 %v295_v22, 352 }
 0x17a   :  { %357 = vbcast.lane.b32.xlu1 %v295_v22, 376  ;;  %353 = vbcast.lane.b32.xlu0 %v295_v22, 368 }
 0x17e   :  { %368 = vbcast.lane.b32.xlu1 %v362_v24, 264  ;;  %364 = vbcast.lane.b32.xlu0 %v362_v24, 256 }
 0x182   :  { %376 = vbcast.lane.b32.xlu1 %v362_v24, 280  ;;  %372 = vbcast.lane.b32.xlu0 %v362_v24, 272 }
 0x186   :  { %384 = vbcast.lane.b32.xlu1 %v362_v24, 296  ;;  %380 = vbcast.lane.b32.xlu0 %v362_v24, 288 }
 0x18a   :  { %392 = vbcast.lane.b32.xlu1 %v362_v24, 312  ;;  %388 = vbcast.lane.b32.xlu0 %v362_v24, 304 }
 0x18e   :  { %400 = vbcast.lane.b32.xlu1 %v362_v24, 328  ;;  %396 = vbcast.lane.b32.xlu0 %v362_v24, 320 }
 0x190   :  { %v2716_v25 = vpop.permute.xlu1 %171  ;;  %v2718_v26 = vpop.permute.xlu0 %163 }
 0x192   :  { %408 = vbcast.lane.b32.xlu1 %v362_v24, 344  ;;  %404 = vbcast.lane.b32.xlu0 %v362_v24, 336 }
 0x194   :  { %v2720_v27 = vpop.permute.xlu1 %175  ;;  %v2722_v28 = vpop.permute.xlu0 %167 }
 0x196   :  { %416 = vbcast.lane.b32.xlu1 %v362_v24, 360  ;;  %412 = vbcast.lane.b32.xlu0 %v362_v24, 352 }
 0x198   :  { %v2725_v30 = vpop.permute.xlu1 %183  ;;  %v2727_v31 = vpop.permute.xlu0 %179 }
 0x19a   :  { %424 = vbcast.lane.b32.xlu1 %v362_v24, 376  ;;  %420 = vbcast.lane.b32.xlu0 %v362_v24, 368 }
 0x19c   :  { %v2732_v33 = vpop.permute.xlu1 %191  ;;  %v2734_v34 = vpop.permute.xlu0 %187 }
 0x19e   :  { %435 = vbcast.lane.b32.xlu1 %v2730_v32, 264  ;;  %431 = vbcast.lane.b32.xlu0 %v2730_v32, 256 }
 0x1a0   :  { %v2738_v35 = vpop.permute.xlu1 %199  ;;  %v2740_v36 = vpop.permute.xlu0 %195 }
 0x1a2   :  { %443 = vbcast.lane.b32.xlu1 %v2730_v32, 280  ;;  %439 = vbcast.lane.b32.xlu0 %v2730_v32, 272 }
 0x1a4   :  { %v2744_v37 = vpop.permute.xlu1 %207  ;;  %v2746_v38 = vpop.permute.xlu0 %203 }
 0x1a5   :  { %4081 = vst [vmem:[#allocation13_spill] sm:$0xff] %v2744_v37  ;;  %4082 = vst [vmem:[#allocation14_spill] sm:$0xff] %v2746_v38 }
 0x1a6   :  { %451 = vbcast.lane.b32.xlu1 %v2730_v32, 296  ;;  %447 = vbcast.lane.b32.xlu0 %v2730_v32, 288 }
 0x1a8   :  { %v2750_v39 = vpop.permute.xlu1 %215  ;;  %v2752_v40 = vpop.permute.xlu0 %211 }
 0x1a9   :  { %4083 = vst [vmem:[#allocation15_spill] sm:$0xff] %v2750_v39  ;;  %4084 = vst [vmem:[#allocation16_spill] sm:$0xff] %v2752_v40 }
 0x1aa   :  { %459 = vbcast.lane.b32.xlu1 %v2730_v32, 312  ;;  %455 = vbcast.lane.b32.xlu0 %v2730_v32, 304 }
 0x1ac   :  { %v2757_v42 = vpop.permute.xlu1 %223  ;;  %v2759_v43 = vpop.permute.xlu0 %219 }
 0x1ad   :  { %4085 = vst [vmem:[#allocation17_spill] sm:$0xff] %v2757_v42  ;;  %4086 = vst [vmem:[#allocation18_spill] sm:$0xff] %v2759_v43 }
 0x1ae   :  { %467 = vbcast.lane.b32.xlu1 %v2730_v32, 328  ;;  %463 = vbcast.lane.b32.xlu0 %v2730_v32, 320 }
 0x1b0   :  { %v2766_v45 = vpop.permute.xlu1 %234  ;;  %v2768_v46 = vpop.permute.xlu0 %230 }
 0x1b2   :  { %502 = vbcast.lane.b32.xlu1 %v2764_v44, 264  ;;  %498 = vbcast.lane.b32.xlu0 %v2764_v44, 256 }
 0x1b4   :  { %v2773_v48 = vpop.permute.xlu1 %242  ;;  %v2775_v49 = vpop.permute.xlu0 %238 }
 0x1b6   :  { %510 = vbcast.lane.b32.xlu1 %v2764_v44, 280  ;;  %506 = vbcast.lane.b32.xlu0 %v2764_v44, 272 }
 0x1b8   :  { %v2782_v51 = vpop.permute.xlu1 %250  ;;  %v2784_v52 = vpop.permute.xlu0 %246 }
 0x1ba   :  { %569 = vbcast.lane.b32.xlu1 %v2780_v50, 264  ;;  %565 = vbcast.lane.b32.xlu0 %v2780_v50, 256 }
 0x1bc   :  { %v2789_v54 = vpop.permute.xlu1 %258  ;;  %v2791_v55 = vpop.permute.xlu0 %254 }
 0x1be   :  { %577 = vbcast.lane.b32.xlu1 %v2780_v50, 280  ;;  %573 = vbcast.lane.b32.xlu0 %v2780_v50, 272 }
 0x1c0   :  { %v2798_v57 = vpop.permute.xlu1 %266  ;;  %v2800_v58 = vpop.permute.xlu0 %262 }
 0x1c2   :  { %636 = vbcast.lane.b32.xlu1 %v2796_v56, 264  ;;  %632 = vbcast.lane.b32.xlu0 %v2796_v56, 256 }
 0x1c4   :  { %v2804_v59 = vpop.permute.xlu1 %274  ;;  %v2806_v60 = vpop.permute.xlu0 %270 }
 0x1c5   :  { %4087 = vst [vmem:[#allocation19_spill] sm:$0xff] %v2804_v59  ;;  %4088 = vst [vmem:[#allocation20_spill] sm:$0xff] %v2806_v60 }
 0x1c6   :  { %518 = vbcast.lane.b32.xlu1 %v2764_v44, 296  ;;  %514 = vbcast.lane.b32.xlu0 %v2764_v44, 288 }
 0x1c8   :  { %v2810_v61 = vpop.permute.xlu1 %282  ;;  %v2812_v62 = vpop.permute.xlu0 %278 }
 0x1c9   :  { %4089 = vst [vmem:[#allocation21_spill] sm:$0xff] %v2810_v61  ;;  %4090 = vst [vmem:[#allocation22_spill] sm:$0xff] %v2812_v62 }
 0x1ca   :  { %644 = vbcast.lane.b32.xlu1 %v2796_v56, 280  ;;  %640 = vbcast.lane.b32.xlu0 %v2796_v56, 272 }
 0x1cc   :  { %v2816_v63 = vpop.permute.xlu1 %290  ;;  %v2818_v0 = vpop.permute.xlu0 %286 }
 0x1cd   :  { %4091 = vst [vmem:[#allocation23_spill] sm:$0xff] %v2816_v63  ;;  %4092 = vst [vmem:[#allocation24_spill] sm:$0xff] %v2818_v0 }
 0x1ce   :  { %585 = vbcast.lane.b32.xlu1 %v2780_v50, 296  ;;  %581 = vbcast.lane.b32.xlu0 %v2780_v50, 288 }
 0x1d0   :  { %v2822_v1 = vpop.permute.xlu1 %301  ;;  %v2824_v2 = vpop.permute.xlu0 %297 }
 0x1d2   :  { %526 = vbcast.lane.b32.xlu1 %v2764_v44, 312  ;;  %522 = vbcast.lane.b32.xlu0 %v2764_v44, 304 }
 0x1d4   :  { %v2828_v3 = vpop.permute.xlu1 %309  ;;  %v2830_v4 = vpop.permute.xlu0 %305 }
 0x1d6   :  { %652 = vbcast.lane.b32.xlu1 %v2796_v56, 296  ;;  %648 = vbcast.lane.b32.xlu0 %v2796_v56, 288 }
 0x1d8   :  { %v2834_v5 = vpop.permute.xlu1 %317  ;;  %v2836_v6 = vpop.permute.xlu0 %313 }
 0x1da   :  { %593 = vbcast.lane.b32.xlu1 %v2780_v50, 312  ;;  %589 = vbcast.lane.b32.xlu0 %v2780_v50, 304 }
 0x1dc   :  { %v2840_v7 = vpop.permute.xlu1 %325  ;;  %v2842_v8 = vpop.permute.xlu0 %321 }
 0x1de   :  { %534 = vbcast.lane.b32.xlu1 %v2764_v44, 328  ;;  %530 = vbcast.lane.b32.xlu0 %v2764_v44, 320 }
 0x1e0   :  { %v2846_v9 = vpop.permute.xlu1 %333  ;;  %v2848_v10 = vpop.permute.xlu0 %329 }
 0x1e2   :  { %660 = vbcast.lane.b32.xlu1 %v2796_v56, 312  ;;  %656 = vbcast.lane.b32.xlu0 %v2796_v56, 304 }
 0x1e4   :  { %v2852_v13 = vpop.permute.xlu1 %341  ;;  %v2854_v14 = vpop.permute.xlu0 %337 }
 0x1e5   :  { %4093 = vst [vmem:[#allocation25_spill] sm:$0xff] %v2852_v13  ;;  %4094 = vst [vmem:[#allocation26_spill] sm:$0xff] %v2854_v14 }
 0x1e6   :  { %475 = vbcast.lane.b32.xlu1 %v2730_v32, 344  ;;  %471 = vbcast.lane.b32.xlu0 %v2730_v32, 336 }
 0x1e8   :  { %v2858_v15 = vpop.permute.xlu1 %349  ;;  %v2860_v16 = vpop.permute.xlu0 %345 }
 0x1e9   :  { %4095 = vst [vmem:[#allocation27_spill] sm:$0xff] %v2858_v15  ;;  %4096 = vst [vmem:[#allocation28_spill] sm:$0xff] %v2860_v16 }
 0x1ea   :  { %601 = vbcast.lane.b32.xlu1 %v2780_v50, 328  ;;  %597 = vbcast.lane.b32.xlu0 %v2780_v50, 320 }
 0x1ec   :  { %v2864_v17 = vpop.permute.xlu1 %357  ;;  %v2866_v18 = vpop.permute.xlu0 %353 }
 0x1ed   :  { %4097 = vst [vmem:[#allocation29_spill] sm:$0xff] %v2864_v17  ;;  %4098 = vst [vmem:[#allocation30_spill] sm:$0xff] %v2866_v18 }
 0x1ee   :  { %542 = vbcast.lane.b32.xlu1 %v2764_v44, 344  ;;  %538 = vbcast.lane.b32.xlu0 %v2764_v44, 336 }
 0x1f0   :  { %v2870_v19 = vpop.permute.xlu1 %368  ;;  %v2872_v20 = vpop.permute.xlu0 %364 }
 0x1f2   :  { %668 = vbcast.lane.b32.xlu1 %v2796_v56, 328  ;;  %664 = vbcast.lane.b32.xlu0 %v2796_v56, 320 }
 0x1f4   :  { %v2876_v21 = vpop.permute.xlu1 %376  ;;  %v2878_v22 = vpop.permute.xlu0 %372 }
 0x1f6   :  { %483 = vbcast.lane.b32.xlu1 %v2730_v32, 360  ;;  %479 = vbcast.lane.b32.xlu0 %v2730_v32, 352 }
 0x1f8   :  { %v2882_v23 = vpop.permute.xlu1 %384  ;;  %v2884_v24 = vpop.permute.xlu0 %380 }
 0x1fa   :  { %609 = vbcast.lane.b32.xlu1 %v2780_v50, 344  ;;  %605 = vbcast.lane.b32.xlu0 %v2780_v50, 336 }
 0x1fc   :  { %v2888_v29 = vpop.permute.xlu1 %392  ;;  %v2890_v41 = vpop.permute.xlu0 %388 }
 0x1fe   :  { %550 = vbcast.lane.b32.xlu1 %v2764_v44, 360  ;;  %546 = vbcast.lane.b32.xlu0 %v2764_v44, 352 }
 0x200   :  { %v2894_v47 = vpop.permute.xlu1 %400  ;;  %v2896_v53 = vpop.permute.xlu0 %396 }
 0x201   :  { %4099 = vst [vmem:[#allocation31_spill] sm:$0xff] %v2894_v47  ;;  %4100 = vst [vmem:[#allocation32_spill] sm:$0xff] %v2896_v53 }
 0x202   :  { %676 = vbcast.lane.b32.xlu1 %v2796_v56, 344  ;;  %672 = vbcast.lane.b32.xlu0 %v2796_v56, 336 }
 0x204   :  { %v2900_v11 = vpop.permute.xlu1 %408  ;;  %v2902_v18 = vpop.permute.xlu0 %404 }
 0x205   :  { %4101 = vst [vmem:[#allocation33_spill] sm:$0xff] %v2900_v11  ;;  %4102 = vst [vmem:[#allocation34_spill] sm:$0xff] %v2902_v18 }
 0x206   :  { %491 = vbcast.lane.b32.xlu1 %v2730_v32, 376  ;;  %487 = vbcast.lane.b32.xlu0 %v2730_v32, 368 }
 0x208   :  { %v2906_v17 = vpop.permute.xlu1 %416  ;;  %v2908_v0 = vpop.permute.xlu0 %412 }
 0x209   :  { %4103 = vst [vmem:[#allocation35_spill] sm:$0xff] %v2906_v17  ;;  %4104 = vst [vmem:[#allocation36_spill] sm:$0xff] %v2908_v0 }
 0x20a   :  { %617 = vbcast.lane.b32.xlu1 %v2780_v50, 360  ;;  %613 = vbcast.lane.b32.xlu0 %v2780_v50, 352 }
 0x20c   :  { %v2912_v63 = vpop.permute.xlu1 %424  ;;  %v2914_v43 = vpop.permute.xlu0 %420 }
 0x20d   :  { %4105 = vst [vmem:[#allocation37_spill] sm:$0xff] %v2912_v63  ;;  %4106 = vst [vmem:[#allocation38_spill] sm:$0xff] %v2914_v43 }
 0x20e   :  { %558 = vbcast.lane.b32.xlu1 %v2764_v44, 376  ;;  %554 = vbcast.lane.b32.xlu0 %v2764_v44, 368 }
 0x210   :  { %v2918_v42 = vpop.permute.xlu1 %435  ;;  %v2920_v15 = vpop.permute.xlu0 %431 }
 0x212   :  { %684 = vbcast.lane.b32.xlu1 %v2796_v56, 360  ;;  %680 = vbcast.lane.b32.xlu0 %v2796_v56, 352 }
 0x214   :  { %v2924_v32 = vpop.permute.xlu1 %443  ;;  %v2926_v17 = vpop.permute.xlu0 %439 }
 0x216   :  { %625 = vbcast.lane.b32.xlu1 %v2780_v50, 376  ;;  %621 = vbcast.lane.b32.xlu0 %v2780_v50, 368  ;;  %v2949_v50 = vld [vmem:[%s4072_s2] ss:$0 sm:$0xff] }
 0x217   :  { %v701_v18 = vmul.f32 %v2949_v50, %v2718_v26  ;;  %v717_v39 = vmul.f32 %v2949_v50, %v2768_v46  ;;  %v718_v14 = vmul.f32 %v2949_v50, %v2766_v45  ;;  %v703_v46 = vmul.f32 %v2949_v50, %v2716_v25 }
 0x218   :  { %v2930_v63 = vpop.permute.xlu0 %447  ;;  %v2932_v43 = vpop.permute.xlu1 %451  ;;  %v704_v53 = vmul.f32 %v2949_v50, %v2720_v27  ;;  %v719_v38 = vmul.f32 %v2949_v50, %v2775_v49  ;;  %v720_v27 = vmul.f32 %v2949_v50, %v2773_v48  ;;  %v734_v48 = vmul.f32 %v2949_v50, %v2822_v1 }
 0x21a   :  { %692 = vbcast.lane.b32.xlu1 %v2796_v56, 376  ;;  %688 = vbcast.lane.b32.xlu0 %v2796_v56, 368  ;;  %v2958_v56 = vld [vmem:[%s4073_s3] ss:$0 sm:$0xff] }
 0x21b   :  { %v836_v40 = vadd.f32 %v2958_v56, %v701_v18  ;;  %v852_v47 = vadd.f32 %v2958_v56, %v717_v39  ;;  %v2977_v18 = vld [vmem:[%s4074_s4] ss:$0 sm:$0xff]  ;;  %v838_v45 = vadd.f32 %v2958_v56, %v703_v46  ;;  %v733_v46 = vmul.f32 %v2949_v50, %v2824_v2 }
 0x21c   :  { %v2936_v44 = vpop.permute.xlu0 %455  ;;  %v2938_v0 = vpop.permute.xlu1 %459 }
 0x21d   :  { %4107 = vst [vmem:[#allocation39_spill] sm:$0xff] %v2938_v0  ;;  %v964_v13 = vmax.f32 %v836_v40, 0.0  ;;  %v853_v40 = vadd.f32 %v2958_v56, %v718_v14  ;;  %v980_v59 = vmax.f32 %v852_v47, 0.0  ;;  %v966_v47 = vmax.f32 %v838_v45, 0.0 }
 0x21e   :  { %v868_v45 = vadd.f32 %v2958_v56, %v733_v46 }
 0x21f   :  { %v1099_v39 = vmul.f32 %v2977_v18, %v964_v13  ;;  %v981_v25 = vmax.f32 %v853_v40, 0.0  ;;  %v1115_v14 = vmul.f32 %v2977_v18, %v980_v59  ;;  %v854_v13 = vadd.f32 %v2958_v56, %v719_v38 }
 0x220   :  { %v2940_v16 = vpop.permute.xlu0 %463  ;;  %v2942_v11 = vpop.permute.xlu1 %467  ;;  %v855_v40 = vadd.f32 %v2958_v56, %v720_v27  ;;  %v1101_v2 = vmul.f32 %v2977_v18, %v966_v47  ;;  %v736_v27 = vmul.f32 %v2949_v50, %v2828_v3  ;;  %v750_v3 = vmul.f32 %v2949_v50, %v2870_v19 }
 0x221   :  { %4108 = vst [vmem:[#allocation40_spill] sm:$0xff] %v2940_v16  ;;  %4109 = vst [vmem:[#allocation41_spill] sm:$0xff] %v2942_v11  ;;  %v702_v11 = vmul.f32 %v2949_v50, %v2722_v28  ;;  %v1116_v59 = vmul.f32 %v2977_v18, %v981_v25  ;;  %v982_v38 = vmax.f32 %v854_v13, 0.0  ;;  %v996_v25 = vmax.f32 %v868_v45, 0.0 }
 0x223   :  { %v837_v28 = vadd.f32 %v2958_v56, %v702_v11  ;;  %v839_v11 = vadd.f32 %v2958_v56, %v704_v53  ;;  %v1117_v47 = vmul.f32 %v2977_v18, %v982_v38 }
 0x224   :  { %v2944_v12 = vpop.permute.xlu0 %498  ;;  %v2953_v62 = vpop.permute.xlu1 %502 }
 0x225   :  { %v965_v37 = vmax.f32 %v837_v28, 0.0  ;;  %v967_v53 = vmax.f32 %v839_v11, 0.0  ;;  %v869_v11 = vadd.f32 %v2958_v56, %v734_v48  ;;  %v871_v48 = vadd.f32 %v2958_v56, %v736_v27 }
 0x227   :  { %v1100_v28 = vmul.f32 %v2977_v18, %v965_v37  ;;  %v735_v37 = vmul.f32 %v2949_v50, %v2830_v4  ;;  %v1102_v1 = vmul.f32 %v2977_v18, %v967_v53  ;;  %v749_v4 = vmul.f32 %v2949_v50, %v2872_v20 }
 0x228   :  { %v2960_v61 = vpop.permute.xlu0 %506  ;;  %v2967_v16 = vpop.permute.xlu1 %510  ;;  %v999_v19 = vmax.f32 %v871_v48, 0.0 }
 0x229   :  { %v870_v13 = vadd.f32 %v2958_v56, %v735_v37  ;;  %v884_v20 = vadd.f32 %v2958_v56, %v749_v4  ;;  %v1131_v37 = vmul.f32 %v2977_v18, %v996_v25 }
 0x22b   :  { %v998_v45 = vmax.f32 %v870_v13, 0.0  ;;  %v1012_v25 = vmax.f32 %v884_v20, 0.0 }
 0x22c   :  { %v2969_v26 = vpop.permute.xlu0 %565  ;;  %v2985_v60 = vpop.permute.xlu1 %569 }
 0x22d   :  { %v1133_v13 = vmul.f32 %v2977_v18, %v998_v45  ;;  %v1147_v45 = vmul.f32 %v2977_v18, %v1012_v25 }
 0x230   :  { %v2991_v0 = vpop.permute.xlu0 %573  ;;  %v3001_v49 = vpop.permute.xlu1 %577 }
 0x239   :  { %1227 = vadd.xlane.f32.xlu0 %v1099_v39  ;;  %v3003_v39 = vpop.permute.xlu0 %632 }
 0x23d   :  { %1259 = vadd.xlane.f32.xlu0 %v1115_v14  ;;  %v983_v14 = vmax.f32 %v855_v40, 0.0  ;;  %v3022_v46 = vpop.permute.xlu0 %514  ;;  %v997_v40 = vmax.f32 %v869_v11, 0.0  ;;  %v706_v11 = vmul.f32 %v2949_v50, %v2725_v30  ;;  %v722_v30 = vmul.f32 %v2949_v50, %v2782_v51 }
 0x23e   :  { %1229 = vadd.xlane.f32.xlu1 %v1100_v28  ;;  %v3016_v28 = vpop.permute.xlu1 %636 }
 0x23f   :  { %v1118_v53 = vmul.f32 %v2977_v18, %v983_v14  ;;  %v885_v14 = vadd.f32 %v2958_v56, %v750_v3  ;;  %v1132_v27 = vmul.f32 %v2977_v18, %v997_v40  ;;  %v841_v4 = vadd.f32 %v2958_v56, %v706_v11 }
 0x240   :  { %v1134_v40 = vmul.f32 %v2977_v18, %v999_v19  ;;  %v857_v51 = vadd.f32 %v2958_v56, %v722_v30  ;;  %v737_v30 = vmul.f32 %v2949_v50, %v2836_v6 }
 0x241   :  { %1261 = vadd.xlane.f32.xlu0 %v1116_v59  ;;  %v705_v59 = vmul.f32 %v2949_v50, %v2727_v31  ;;  %v3035_v38 = vpop.permute.xlu0 %640  ;;  %v969_v20 = vmax.f32 %v841_v4, 0.0 }
 0x242   :  { %1231 = vadd.xlane.f32.xlu1 %v1101_v2  ;;  %v3033_v2 = vpop.permute.xlu1 %518  ;;  %v985_v25 = vmax.f32 %v857_v51, 0.0  ;;  %v767_v51 = vmul.f32 %v2949_v50, %v2926_v17  ;;  %v781_v17 = vmul.f32 %v2949_v50, %v2944_v12 }
 0x243   :  { %v840_v31 = vadd.f32 %v2958_v56, %v705_v59  ;;  %v1104_v4 = vmul.f32 %v2977_v18, %v969_v20  ;;  %v872_v20 = vadd.f32 %v2958_v56, %v737_v30 }
 0x245   :  { %1233 = vadd.xlane.f32.xlu0 %v1102_v1  ;;  %v721_v1 = vmul.f32 %v2949_v50, %v2784_v52  ;;  %v968_v3 = vmax.f32 %v840_v31, 0.0  ;;  %v751_v52 = vmul.f32 %v2949_v50, %v2878_v22  ;;  %v3054_v59 = vpop.permute.xlu0 %581  ;;  %v765_v22 = vmul.f32 %v2949_v50, %v2920_v15 }
 0x246   :  { %1263 = vadd.xlane.f32.xlu1 %v1117_v47  ;;  %v1013_v47 = vmax.f32 %v885_v14, 0.0  ;;  %v3048_v48 = vpop.permute.xlu1 %644 }
 0x247   :  { %v886_v14 = vadd.f32 %v2958_v56, %v751_v52 }
 0x248   :  { %v1148_v11 = vmul.f32 %v2977_v18, %v1013_v47  ;;  %v900_v47 = vadd.f32 %v2958_v56, %v765_v22 }
 0x249   :  { %1265 = vadd.xlane.f32.xlu0 %v1118_v53  ;;  %v856_v53 = vadd.f32 %v2958_v56, %v721_v1  ;;  %v3067_v1 = vpop.permute.xlu0 %522  ;;  %v1014_v15 = vmax.f32 %v886_v14, 0.0  ;;  %v768_v14 = vmul.f32 %v2949_v50, %v2924_v32  ;;  %v782_v32 = vmul.f32 %v2949_v50, %v2953_v62 }
 0x24a   :  { %1291 = vadd.xlane.f32.xlu1 %v1131_v37  ;;  %v752_v37 = vmul.f32 %v2949_v50, %v2876_v21  ;;  %v3065_v31 = vpop.permute.xlu1 %585  ;;  %v766_v21 = vmul.f32 %v2949_v50, %v2918_v42  ;;  %v1120_v42 = vmul.f32 %v2977_v18, %v985_v25  ;;  %v1028_v6 = vmax.f32 %v900_v47, 0.0 }
 0x24b   :  { %v984_v19 = vmax.f32 %v856_v53, 0.0  ;;  %v902_v25 = vadd.f32 %v2958_v56, %v767_v51 }
 0x24c   :  { %v901_v52 = vadd.f32 %v2958_v56, %v766_v21 }
 0x24d   :  { %1293 = vadd.xlane.f32.xlu0 %v1132_v27  ;;  %v1103_v27 = vmul.f32 %v2977_v18, %v968_v3  ;;  %v738_v3 = vmul.f32 %v2949_v50, %v2834_v5  ;;  %v1030_v12 = vmax.f32 %v902_v25, 0.0 }
 0x24e   :  { %1295 = vadd.xlane.f32.xlu1 %v1133_v13  ;;  %v887_v13 = vadd.f32 %v2958_v56, %v752_v37  ;;  %v3086_v37 = vpop.permute.xlu0 %648 }
 0x24f   :  { %v873_v5 = vadd.f32 %v2958_v56, %v738_v3  ;;  %v916_v3 = vadd.f32 %v2958_v56, %v781_v17 }
 0x250   :  { %v1015_v53 = vmax.f32 %v887_v13, 0.0  ;;  %v1163_v13 = vmul.f32 %v2977_v18, %v1028_v6 }
 0x251   :  { %1297 = vadd.xlane.f32.xlu0 %v1134_v40  ;;  %v1119_v40 = vmul.f32 %v2977_v18, %v984_v19  ;;  %v1029_v19 = vmax.f32 %v901_v52, 0.0  ;;  %v1001_v30 = vmax.f32 %v873_v5, 0.0  ;;  %v708_v52 = vmul.f32 %v2949_v50, %v2732_v33 }
 0x252   :  { %1323 = vadd.xlane.f32.xlu1 %v1147_v45  ;;  %v3080_v45 = vpop.permute.xlu1 %526  ;;  %v1150_v22 = vmul.f32 %v2977_v18, %v1015_v53 }
 0x253   :  { %v1164_v47 = vmul.f32 %v2977_v18, %v1029_v19  ;;  %v1136_v62 = vmul.f32 %v2977_v18, %v1001_v30  ;;  %v1165_v19 = vmul.f32 %v2977_v18, %v1030_v12  ;;  %v843_v33 = vadd.f32 %v2958_v56, %v708_v52 }
 0x255   :  { %1325 = vadd.xlane.f32.xlu0 %v1148_v11  ;;  %v1149_v11 = vmul.f32 %v2977_v18, %v1014_v15  ;;  %v903_v15 = vadd.f32 %v2958_v56, %v768_v14  ;;  %v724_v14 = vmul.f32 %v2949_v50, %v2789_v54 }
 0x256   :  { %1235 = vadd.xlane.f32.xlu1 %v1103_v27  ;;  %v1000_v27 = vmax.f32 %v872_v20, 0.0  ;;  %v3097_v21 = vpop.permute.xlu1 %652  ;;  %v917_v20 = vadd.f32 %v2958_v56, %v782_v32  ;;  %v971_v32 = vmax.f32 %v843_v33, 0.0 }
 0x257   :  { %v859_v54 = vadd.f32 %v2958_v56, %v724_v14 }
 0x258   :  { %v1135_v53 = vmul.f32 %v2977_v18, %v1000_v27 }
 0x259   :  { %1237 = vadd.xlane.f32.xlu0 %v1104_v4  ;;  %v3099_v4 = vpop.permute.xlu0 %589  ;;  %v987_v52 = vmax.f32 %v859_v54, 0.0 }
 0x25a   :  { %1267 = vadd.xlane.f32.xlu1 %v1119_v40  ;;  %v707_v40 = vmul.f32 %v2949_v50, %v2734_v34  ;;  %v3112_v6 = vpop.permute.xlu1 %593  ;;  %v723_v34 = vmul.f32 %v2949_v50, %v2791_v55  ;;  %v753_v55 = vmul.f32 %v2949_v50, %v2884_v24  ;;  %v783_v24 = vmul.f32 %v2949_v50, %v2960_v61 }
 0x25b   :  { %v797_v61 = vmul.f32 %v2949_v50, %v2969_v26 }
 0x25c   :  { %v842_v51 = vadd.f32 %v2958_v56, %v707_v40  ;;  %v858_v17 = vadd.f32 %v2958_v56, %v723_v34  ;;  %v918_v34 = vadd.f32 %v2958_v56, %v783_v24 }
 0x25d   :  { %1269 = vadd.xlane.f32.xlu0 %v1120_v42  ;;  %v1031_v42 = vmax.f32 %v903_v15, 0.0  ;;  %v3118_v5 = vpop.permute.xlu0 %530  ;;  %v932_v26 = vadd.f32 %v2958_v56, %v797_v61 }
 0x25e   :  { %1327 = vadd.xlane.f32.xlu1 %v1149_v11  ;;  %v1044_v11 = vmax.f32 %v916_v3, 0.0  ;;  %v970_v25 = vmax.f32 %v842_v51, 0.0  ;;  %v3129_v30 = vpop.permute.xlu1 %534  ;;  %v986_v12 = vmax.f32 %v858_v17, 0.0  ;;  %v888_v3 = vadd.f32 %v2958_v56, %v753_v55 }
 0x25f   :  { %v1166_v27 = vmul.f32 %v2977_v18, %v1031_v42 }
 0x260   :  { %v1016_v51 = vmax.f32 %v888_v3, 0.0 }
 0x261   :  { %1329 = vadd.xlane.f32.xlu0 %v1150_v22  ;;  %v1045_v22 = vmax.f32 %v917_v20, 0.0  ;;  %v3131_v15 = vpop.permute.xlu0 %656  ;;  %v784_v20 = vmul.f32 %v2949_v50, %v2967_v16  ;;  %v798_v16 = vmul.f32 %v2949_v50, %v2985_v60 }
 0x262   :  { %1355 = vadd.xlane.f32.xlu1 %v1163_v13  ;;  %v1179_v13 = vmul.f32 %v2977_v18, %v1044_v11  ;;  %v1151_v17 = vmul.f32 %v2977_v18, %v1016_v51 }
 0x263   :  { %v1180_v40 = vmul.f32 %v2977_v18, %v1045_v22  ;;  %v919_v14 = vadd.f32 %v2958_v56, %v784_v20  ;;  %v1122_v22 = vmul.f32 %v2977_v18, %v987_v52  ;;  %v933_v54 = vadd.f32 %v2958_v56, %v798_v16 }
 0x265   :  { %1357 = vadd.xlane.f32.xlu0 %v1164_v47  ;;  %v754_v47 = vmul.f32 %v2949_v50, %v2882_v23  ;;  %v1106_v23 = vmul.f32 %v2977_v18, %v971_v32  ;;  %v3150_v11 = vpop.permute.xlu0 %471  ;;  %v740_v32 = vmul.f32 %v2949_v50, %v2840_v7  ;;  %v1047_v60 = vmax.f32 %v919_v14, 0.0 }
 0x266   :  { %1299 = vadd.xlane.f32.xlu1 %v1135_v53  ;;  %v1105_v53 = vmul.f32 %v2977_v18, %v970_v25  ;;  %v1046_v25 = vmax.f32 %v918_v34, 0.0  ;;  %v770_v7 = vmul.f32 %v2949_v50, %v2932_v43 }
 0x267   :  { %v889_v42 = vadd.f32 %v2958_v56, %v754_v47  ;;  %v875_v24 = vadd.f32 %v2958_v56, %v740_v32 }
 0x268   :  { %v1181_v3 = vmul.f32 %v2977_v18, %v1046_v25  ;;  %v905_v43 = vadd.f32 %v2958_v56, %v770_v7 }
 0x269   :  { %1301 = vadd.xlane.f32.xlu0 %v1136_v62  ;;  %v3144_v62 = vpop.permute.xlu1 %660  ;;  %v1017_v33 = vmax.f32 %v889_v42, 0.0  ;;  %v1182_v42 = vmul.f32 %v2977_v18, %v1047_v60  ;;  %v1003_v61 = vmax.f32 %v875_v24, 0.0  ;;  %v709_v60 = vmul.f32 %v2949_v50, %v2740_v36 }
 0x26a   :  { %1359 = vadd.xlane.f32.xlu1 %v1165_v19  ;;  %v1121_v19 = vmul.f32 %v2977_v18, %v986_v12  ;;  %v1060_v12 = vmax.f32 %v932_v26, 0.0  ;;  %v1033_v26 = vmax.f32 %v905_v43, 0.0  ;;  %v725_v36 = vmul.f32 %v2949_v50, %v2800_v58 }
 0x26b   :  { %v1152_v47 = vmul.f32 %v2977_v18, %v1017_v33  ;;  %v1138_v32 = vmul.f32 %v2977_v18, %v1003_v61  ;;  %v844_v24 = vadd.f32 %v2958_v56, %v709_v60  ;;  %v755_v58 = vmul.f32 %v2949_v50, %v2890_v41 }
 0x26c   :  { %v1195_v34 = vmul.f32 %v2977_v18, %v1060_v12  ;;  %v860_v61 = vadd.f32 %v2958_v56, %v725_v36  ;;  %v785_v41 = vmul.f32 %v2949_v50, %v3022_v46  ;;  %v786_v60 = vmul.f32 %v2949_v50, %v3033_v2 }
 0x26d   :  { %1361 = vadd.xlane.f32.xlu0 %v1166_v27  ;;  %v739_v27 = vmul.f32 %v2949_v50, %v2842_v8  ;;  %v3161_v55 = vpop.permute.xlu1 %475  ;;  %v815_v46 = vmul.f32 %v2949_v50, %v3035_v38  ;;  %v816_v2 = vmul.f32 %v2949_v50, %v3048_v48  ;;  %v741_v36 = vmul.f32 %v2949_v50, %v2848_v10 }
 0x26e   :  { %1387 = vadd.xlane.f32.xlu1 %v1179_v13  ;;  %v3163_v13 = vpop.permute.xlu0 %597 }
 0x26f   :  { %v874_v8 = vadd.f32 %v2958_v56, %v739_v27  ;;  %v950_v38 = vadd.f32 %v2958_v56, %v815_v46  ;;  %v876_v10 = vadd.f32 %v2958_v56, %v741_v36 }
 0x271   :  { %1389 = vadd.xlane.f32.xlu0 %v1180_v40  ;;  %v769_v40 = vmul.f32 %v2949_v50, %v2930_v63  ;;  %v3176_v52 = vpop.permute.xlu1 %601  ;;  %v1002_v20 = vmax.f32 %v874_v8, 0.0  ;;  %v799_v63 = vmul.f32 %v2949_v50, %v2991_v0  ;;  %v813_v0 = vmul.f32 %v2949_v50, %v3003_v39 }
 0x272   :  { %1239 = vadd.xlane.f32.xlu1 %v1105_v53  ;;  %v1061_v53 = vmax.f32 %v933_v54, 0.0  ;;  %v3182_v51 = vpop.permute.xlu0 %538  ;;  %v710_v8 = vmul.f32 %v2949_v50, %v2738_v35 }
 0x273   :  { %v934_v16 = vadd.f32 %v2958_v56, %v799_v63  ;;  %v948_v54 = vadd.f32 %v2958_v56, %v813_v0 }
 0x274   :  { %v1196_v33 = vmul.f32 %v2977_v18, %v1061_v53  ;;  %v845_v35 = vadd.f32 %v2958_v56, %v710_v8 }
 0x275   :  { %1241 = vadd.xlane.f32.xlu0 %v1106_v23  ;;  %v904_v23 = vadd.f32 %v2958_v56, %v769_v40  ;;  %v3193_v27 = vpop.permute.xlu1 %542  ;;  %v1062_v39 = vmax.f32 %v934_v16, 0.0  ;;  %v1076_v7 = vmax.f32 %v948_v54, 0.0  ;;  %v756_v16 = vmul.f32 %v2949_v50, %v2888_v29 }
 0x276   :  { %1271 = vadd.xlane.f32.xlu1 %v1121_v19  ;;  %v800_v19 = vmul.f32 %v2949_v50, %v3001_v49  ;;  %v3195_v25 = vpop.permute.xlu0 %664  ;;  %v814_v49 = vmul.f32 %v2949_v50, %v3016_v28  ;;  %v1168_v28 = vmul.f32 %v2977_v18, %v1033_v26  ;;  %v890_v26 = vadd.f32 %v2958_v56, %v755_v58 }
 0x277   :  { %v1032_v14 = vmax.f32 %v904_v23, 0.0  ;;  %v1211_v43 = vmul.f32 %v2977_v18, %v1076_v7  ;;  %v1078_v58 = vmax.f32 %v950_v38, 0.0 }
 0x278   :  { %v949_v12 = vadd.f32 %v2958_v56, %v814_v49  ;;  %v1018_v54 = vmax.f32 %v890_v26, 0.0  ;;  %v1004_v26 = vmax.f32 %v876_v10, 0.0 }
 0x279   :  { %1273 = vadd.xlane.f32.xlu0 %v1122_v22  ;;  %v1137_v22 = vmul.f32 %v2977_v18, %v1002_v20  ;;  %v726_v20 = vmul.f32 %v2949_v50, %v2798_v57 }
 0x27a   :  { %1331 = vadd.xlane.f32.xlu1 %v1151_v17  ;;  %v935_v17 = vadd.f32 %v2958_v56, %v800_v19  ;;  %v3214_v53 = vpop.permute.xlu0 %479  ;;  %v1077_v23 = vmax.f32 %v949_v12, 0.0 }
 0x27b   :  { %v861_v57 = vadd.f32 %v2958_v56, %v726_v20 }
 0x27c   :  { %v1063_v40 = vmax.f32 %v935_v17, 0.0  ;;  %v1212_v0 = vmul.f32 %v2977_v18, %v1077_v23  ;;  %v742_v23 = vmul.f32 %v2949_v50, %v2846_v9 }
 0x27d   :  { %1333 = vadd.xlane.f32.xlu0 %v1152_v47  ;;  %v1167_v47 = vmul.f32 %v2977_v18, %v1032_v14  ;;  %v973_v14 = vmax.f32 %v845_v35, 0.0  ;;  %v989_v49 = vmax.f32 %v861_v57, 0.0  ;;  %v4110_v57 = vld [vmem:[#allocation39_spill] sm:$0xff] }
 0x27e   :  { %1391 = vadd.xlane.f32.xlu1 %v1181_v3  ;;  %v3208_v3 = vpop.permute.xlu1 %668  ;;  %v1198_v63 = vmul.f32 %v2977_v18, %v1063_v40  ;;  %v772_v9 = vmul.f32 %v2949_v50, %v4110_v57 }
 0x27f   :  { %v1108_v29 = vmul.f32 %v2977_v18, %v973_v14  ;;  %v877_v14 = vadd.f32 %v2958_v56, %v742_v23  ;;  %v4113_v23 = vld [vmem:[#allocation20_spill] sm:$0xff] }
 0x281   :  { %1393 = vadd.xlane.f32.xlu0 %v1182_v42  ;;  %v1197_v42 = vmul.f32 %v2977_v18, %v1062_v39 }
 0x282   :  { %1419 = vadd.xlane.f32.xlu1 %v1195_v34  ;;  %v972_v34 = vmax.f32 %v844_v24, 0.0  ;;  %v3225_v19 = vpop.permute.xlu1 %483  ;;  %v1124_v24 = vmul.f32 %v2977_v18, %v989_v49  ;;  %v1213_v49 = vmul.f32 %v2977_v18, %v1078_v58 }
 0x284   :  { %v1107_v17 = vmul.f32 %v2977_v18, %v972_v34 }
 0x285   :  { %1421 = vadd.xlane.f32.xlu0 %v1196_v33  ;;  %v3227_v33 = vpop.permute.xlu0 %605 }
 0x286   :  { %1303 = vadd.xlane.f32.xlu1 %v1137_v22  ;;  %v988_v22 = vmax.f32 %v860_v61, 0.0  ;;  %v3240_v39 = vpop.permute.xlu1 %609  ;;  %v771_v61 = vmul.f32 %v2949_v50, %v2936_v44  ;;  %v801_v44 = vmul.f32 %v2949_v50, %v3054_v59 }
 0x288   :  { %v1123_v40 = vmul.f32 %v2977_v18, %v988_v22  ;;  %v936_v59 = vadd.f32 %v2958_v56, %v801_v44 }
 0x289   :  { %1305 = vadd.xlane.f32.xlu0 %v1138_v32  ;;  %v891_v32 = vadd.f32 %v2958_v56, %v756_v16  ;;  %v3246_v8 = vpop.permute.xlu0 %546 }
 0x28a   :  { %1363 = vadd.xlane.f32.xlu1 %v1167_v47  ;;  %v920_v47 = vadd.f32 %v2958_v56, %v785_v41  ;;  %v3257_v35 = vpop.permute.xlu1 %550  ;;  %v906_v41 = vadd.f32 %v2958_v56, %v771_v61  ;;  %v4114_v61 = vld [vmem:[#allocation19_spill] sm:$0xff] }
 0x28b   :  { %v1019_v12 = vmax.f32 %v891_v32, 0.0  ;;  %v1005_v32 = vmax.f32 %v877_v14, 0.0  ;;  %v728_v58 = vmul.f32 %v2949_v50, %v4114_v61 }
 0x28c   :  { %v1048_v7 = vmax.f32 %v920_v47, 0.0  ;;  %v4111_v47 = vld [vmem:[#allocation14_spill] sm:$0xff] }
 0x28d   :  { %1365 = vadd.xlane.f32.xlu0 %v1168_v28  ;;  %v921_v28 = vadd.f32 %v2958_v56, %v786_v60  ;;  %v3259_v20 = vpop.permute.xlu0 %672  ;;  %v1154_v34 = vmul.f32 %v2977_v18, %v1019_v12  ;;  %v907_v60 = vadd.f32 %v2958_v56, %v772_v9  ;;  %v711_v46 = vmul.f32 %v2949_v50, %v4111_v47 }
 0x28e   :  { %1423 = vadd.xlane.f32.xlu1 %v1197_v42  ;;  %v1153_v42 = vmul.f32 %v2977_v18, %v1018_v54  ;;  %v1139_v12 = vmul.f32 %v2977_v18, %v1004_v26  ;;  %v1140_v38 = vmul.f32 %v2977_v18, %v1005_v32  ;;  %v863_v32 = vadd.f32 %v2958_v56, %v728_v58  ;;  %v4117_v58 = vld [vmem:[#allocation26_spill] sm:$0xff] }
 0x28f   :  { %v1049_v48 = vmax.f32 %v921_v28, 0.0 }
 0x291   :  { %1425 = vadd.xlane.f32.xlu0 %v1198_v63  ;;  %v951_v63 = vadd.f32 %v2958_v56, %v816_v2  ;;  %v1184_v22 = vmul.f32 %v2977_v18, %v1049_v48  ;;  %v727_v48 = vmul.f32 %v2949_v50, %v4113_v23 }
 0x292   :  { %1451 = vadd.xlane.f32.xlu1 %v1211_v43  ;;  %v1183_v43 = vmul.f32 %v2977_v18, %v1048_v7 }
 0x293   :  { %v1079_v16 = vmax.f32 %v951_v63, 0.0  ;;  %v1064_v63 = vmax.f32 %v936_v59, 0.0 }
 0x295   :  { %1453 = vadd.xlane.f32.xlu0 %v1212_v0  ;;  %v3272_v0 = vpop.permute.xlu1 %676  ;;  %v1214_v54 = vmul.f32 %v2977_v18, %v1079_v16  ;;  %v862_v16 = vadd.f32 %v2958_v56, %v727_v48  ;;  %v1199_v44 = vmul.f32 %v2977_v18, %v1064_v63 }
 0x296   :  { %1243 = vadd.xlane.f32.xlu1 %v1107_v17  ;;  %v3278_v17 = vpop.permute.xlu0 %487 }
 0x297   :  { %v990_v47 = vmax.f32 %v862_v16, 0.0 }
 0x299   :  { %1245 = vadd.xlane.f32.xlu0 %v1108_v29  ;;  %v802_v29 = vmul.f32 %v2949_v50, %v3065_v31  ;;  %v3289_v28 = vpop.permute.xlu1 %491  ;;  %v1035_v31 = vmax.f32 %v907_v60, 0.0  ;;  %v4116_v60 = vld [vmem:[#allocation31_spill] sm:$0xff]  ;;  %v1125_v48 = vmul.f32 %v2977_v18, %v990_v47 }
 0x29a   :  { %1275 = vadd.xlane.f32.xlu1 %v1123_v40  ;;  %v1034_v40 = vmax.f32 %v906_v41, 0.0  ;;  %v3291_v2 = vpop.permute.xlu0 %613 }
 0x29b   :  { %v937_v7 = vadd.f32 %v2958_v56, %v802_v29  ;;  %v1170_v57 = vmul.f32 %v2977_v18, %v1035_v31  ;;  %v758_v29 = vmul.f32 %v2949_v50, %v4116_v60  ;;  %v4119_v60 = vld [vmem:[#allocation40_spill] sm:$0xff] }
 0x29d   :  { %1277 = vadd.xlane.f32.xlu0 %v1124_v24  ;;  %v4112_v24 = vld [vmem:[#allocation13_spill] sm:$0xff]  ;;  %v3304_v14 = vpop.permute.xlu1 %617  ;;  %v893_v31 = vadd.f32 %v2958_v56, %v758_v29  ;;  %v773_v29 = vmul.f32 %v2949_v50, %v4119_v60 }
 0x29e   :  { %1335 = vadd.xlane.f32.xlu1 %v1153_v42  ;;  %v712_v36 = vmul.f32 %v2949_v50, %v4112_v24  ;;  %v846_v42 = vadd.f32 %v2958_v56, %v711_v46  ;;  %v3310_v41 = vpop.permute.xlu0 %554 }
 0x29f   :  { %v1021_v63 = vmax.f32 %v893_v31, 0.0 }
 0x2a0   :  { %v847_v10 = vadd.f32 %v2958_v56, %v712_v36  ;;  %v974_v9 = vmax.f32 %v846_v42, 0.0  ;;  %v991_v36 = vmax.f32 %v863_v32, 0.0 }
 0x2a1   :  { %1337 = vadd.xlane.f32.xlu0 %v1154_v34  ;;  %v1169_v34 = vmul.f32 %v2977_v18, %v1034_v40  ;;  %v787_v40 = vmul.f32 %v2949_v50, %v3067_v1  ;;  %v817_v1 = vmul.f32 %v2949_v50, %v3086_v37 }
 0x2a2   :  { %1395 = vadd.xlane.f32.xlu1 %v1183_v43  ;;  %v1065_v43 = vmax.f32 %v937_v7, 0.0  ;;  %v1109_v59 = vmul.f32 %v2977_v18, %v974_v9  ;;  %v3323_v24 = vpop.permute.xlu0 %680  ;;  %v788_v7 = vmul.f32 %v2949_v50, %v3080_v45  ;;  %v1126_v45 = vmul.f32 %v2977_v18, %v991_v36 }
 0x2a3   :  { %v922_v23 = vadd.f32 %v2958_v56, %v787_v40  ;;  %v952_v37 = vadd.f32 %v2958_v56, %v817_v1  ;;  %v4120_v40 = vld [vmem:[#allocation41_spill] sm:$0xff]  ;;  %v803_v1 = vmul.f32 %v2949_v50, %v3099_v4 }
 0x2a5   :  { %1397 = vadd.xlane.f32.xlu0 %v1184_v22  ;;  %v4115_v22 = vld [vmem:[#allocation32_spill] sm:$0xff] }
 0x2a6   :  { %1455 = vadd.xlane.f32.xlu1 %v1213_v49  ;;  %v757_v26 = vmul.f32 %v2949_v50, %v4115_v22  ;;  %v975_v49 = vmax.f32 %v847_v10, 0.0  ;;  %v818_v10 = vmul.f32 %v2949_v50, %v3097_v21  ;;  %v3342_v9 = vpop.permute.xlu0 %621  ;;  %v4118_v22 = vld [vmem:[#allocation25_spill] sm:$0xff] }
 0x2a8   :  { %v892_v46 = vadd.f32 %v2958_v56, %v757_v26  ;;  %v744_v26 = vmul.f32 %v2949_v50, %v4118_v22 }
 0x2a9   :  { %1457 = vadd.xlane.f32.xlu0 %v1214_v54  ;;  %v1200_v54 = vmul.f32 %v2977_v18, %v1065_v43  ;;  %v743_v43 = vmul.f32 %v2949_v50, %v4117_v58  ;;  %v4123_v58 = vld [vmem:[#allocation21_spill] sm:$0xff] }
 0x2aa   :  { %1307 = vadd.xlane.f32.xlu1 %v1139_v12  ;;  %v3321_v12 = vpop.permute.xlu1 %558  ;;  %v1020_v42 = vmax.f32 %v892_v46, 0.0  ;;  %v3357_v36 = vpop.permute.xlu0 %688  ;;  %v879_v31 = vadd.f32 %v2958_v56, %v744_v26  ;;  %v804_v26 = vmul.f32 %v2949_v50, %v3112_v6 }
 0x2ab   :  { %v878_v32 = vadd.f32 %v2958_v56, %v743_v43  ;;  %v730_v43 = vmul.f32 %v2949_v50, %v4123_v58 }
 0x2ac   :  { %v1155_v16 = vmul.f32 %v2977_v18, %v1020_v42  ;;  %v1007_v4 = vmax.f32 %v879_v31, 0.0 }
 0x2ad   :  { %1309 = vadd.xlane.f32.xlu0 %v1140_v38  ;;  %v1110_v38 = vmul.f32 %v2977_v18, %v975_v49  ;;  %v1156_v49 = vmul.f32 %v2977_v18, %v1021_v63  ;;  %v1006_v42 = vmax.f32 %v878_v32, 0.0  ;;  %v4121_v63 = vld [vmem:[#allocation15_spill] sm:$0xff]  ;;  %v938_v32 = vadd.f32 %v2958_v56, %v803_v1 }
 0x2ae   :  { %1367 = vadd.xlane.f32.xlu1 %v1169_v34  ;;  %v923_v34 = vadd.f32 %v2958_v56, %v788_v7  ;;  %v3336_v61 = vpop.permute.xlu1 %684 }
 0x2af   :  { %v1141_v60 = vmul.f32 %v2977_v18, %v1006_v42  ;;  %v1142_v42 = vmul.f32 %v2977_v18, %v1007_v4  ;;  %v1066_v1 = vmax.f32 %v938_v32, 0.0 }
 0x2b0   :  { %v1051_v21 = vmax.f32 %v923_v34, 0.0  ;;  %v714_v34 = vmul.f32 %v2949_v50, %v4121_v63 }
 0x2b1   :  { %1369 = vadd.xlane.f32.xlu0 %v1170_v57  ;;  %v1050_v57 = vmax.f32 %v922_v23, 0.0  ;;  %v908_v23 = vadd.f32 %v2958_v56, %v773_v29  ;;  %v4126_v29 = vlaneseq }
 0x2b2   :  { %1427 = vadd.xlane.f32.xlu1 %v1199_v44  ;;  %v953_v44 = vadd.f32 %v2958_v56, %v818_v10  ;;  %v3353_v46 = vpop.permute.xlu1 %625  ;;  %v4122_v10 = vld [vmem:[#allocation16_spill] sm:$0xff] }
 0x2b3   :  { %v1185_v47 = vmul.f32 %v2977_v18, %v1050_v57  ;;  %v4124_v57 = vld [vmem:[#allocation22_spill] sm:$0xff] }
 0x2b4   :  { %v1081_v7 = vmax.f32 %v953_v44, 0.0 }
 0x2b5   :  { %1429 = vadd.xlane.f32.xlu0 %v1200_v54  ;;  %v1080_v54 = vmax.f32 %v952_v37, 0.0  ;;  %v729_v37 = vmul.f32 %v2949_v50, %v4124_v57  ;;  %v4127_v57 = vld [vmem:[#allocation34_spill] sm:$0xff] }
 0x2b6   :  { %1247 = vadd.xlane.f32.xlu1 %v1109_v59  ;;  %v774_v59 = vmul.f32 %v2949_v50, %v4120_v40  ;;  %v1216_v44 = vmul.f32 %v2977_v18, %v1081_v7 }
 0x2b7   :  { %v864_v6 = vadd.f32 %v2958_v56, %v729_v37  ;;  %v759_v37 = vmul.f32 %v2949_v50, %v4127_v57 }
 0x2b9   :  { %1249 = vadd.xlane.f32.xlu0 %v1110_v38  ;;  %v1186_v38 = vmul.f32 %v2977_v18, %v1051_v21  ;;  %v3376_v21 = vpop.permute.xlu1 %692 }
 0x2ba   :  { %1279 = vadd.xlane.f32.xlu1 %v1125_v48  ;;  %v1215_v48 = vmul.f32 %v2977_v18, %v1080_v54  ;;  %4125 = vst [vmem:[#allocation39_spill] sm:$0xff] %v3376_v21  ;;  %v3382_v54 = vand.u32 127, %v4126_v29 }
 0x2bc   :  { %v1761_v29 = vadd.s32 4294967272, %v3382_v54 }
 0x2bd   :  { %1281 = vadd.xlane.f32.xlu0 %v1126_v45  ;;  %v713_v45 = vmul.f32 %v2949_v50, %v4122_v10 }
 0x2be   :  { %1339 = vadd.xlane.f32.xlu1 %v1155_v16  ;;  %v909_v16 = vadd.f32 %v2958_v56, %v774_v59  ;;  %v865_v59 = vadd.f32 %v2958_v56, %v730_v43  ;;  %v992_v43 = vmax.f32 %v864_v6, 0.0  ;;  %v1201_v6 = vmul.f32 %v2977_v18, %v1066_v1 }
 0x2bf   :  { %v848_v40 = vadd.f32 %v2958_v56, %v713_v45 }
 0x2c0   :  { %v1037_v31 = vmax.f32 %v909_v16, 0.0  ;;  %v993_v58 = vmax.f32 %v865_v59, 0.0  ;;  %v4128_v16 = vld [vmem:[#allocation12_spill] sm:$0xff]  ;;  %v1127_v57 = vmul.f32 %v2977_v18, %v992_v43 }
 0x2c1   :  { %1341 = vadd.xlane.f32.xlu0 %v1156_v49  ;;  %v1036_v49 = vmax.f32 %v908_v23, 0.0  ;;  %v976_v45 = vmax.f32 %v848_v40, 0.0 }
 0x2c2   :  { %1399 = vadd.xlane.f32.xlu1 %v1185_v47  ;;  %v849_v47 = vadd.f32 %v2958_v56, %v714_v34 }
 0x2c3   :  { %v1171_v34 = vmul.f32 %v2977_v18, %v1036_v49  ;;  %v1754_v49 = vadd.s32 4294967280, %v3382_v54 }
 0x2c4   :  { %v977_v10 = vmax.f32 %v849_v47, 0.0 }
 0x2c5   :  { %1401 = vadd.xlane.f32.xlu0 %v1186_v38  ;;  %v939_v38 = vadd.f32 %v2958_v56, %v804_v26  ;;  %v3396_v26 = vsub.s32 %v3382_v54, %v4128_v16  ;;  %v3415_v1 = vsub.s32 %v1754_v49, %v4128_v16 }
 0x2c6   :  { %1459 = vadd.xlane.f32.xlu1 %v1215_v48  ;;  %v1228_v22 = vpop.xlane.xlu0 %1227  ;;  %v1747_v48 = vadd.s32 4294967288, %v3382_v54 }
 0x2c7   :  { %v1067_v32 = vmax.f32 %v939_v38, 0.0  ;;  %v894_v38 = vadd.f32 %v2958_v56, %v759_v37 }
 0x2c8   :  { %v3402_v47 = vsub.s32 %v1747_v48, %v4128_v16 }
 0x2c9   :  { %1461 = vadd.xlane.f32.xlu0 %v1216_v44  ;;  %v1172_v44 = vmul.f32 %v2977_v18, %v1037_v31  ;;  %v1111_v31 = vmul.f32 %v2977_v18, %v976_v45  ;;  %v1022_v49 = vmax.f32 %v894_v38, 0.0 }
 0x2ca   :  { %1311 = vadd.xlane.f32.xlu1 %v1141_v60  ;;  %v1260_v7 = vpop.xlane.xlu0 %1259 }
 0x2cb   :  { %v1230_v23 = vpop.xlane.xlu1 %1229 }
 0x2cc   :  { %v1483_v63 = vpack.c.bf16 %v1230_v23, %v1228_v22  ;;  %v4129_v23 = vld [vmem:[#allocation33_spill] sm:$0xff] }
 0x2cd   :  { %1313 = vadd.xlane.f32.xlu0 %v1142_v42  ;;  %v760_v42 = vmul.f32 %v2949_v50, %v4129_v23 }
 0x2ce   :  { %1371 = vadd.xlane.f32.xlu1 %v1171_v34  ;;  %v1262_v4 = vpop.xlane.xlu0 %1261  ;;  %v1613_v40 = vunpack.c.l.b16 %v1483_v63  ;;  %v1614_v59 = vunpack.c.h.b16 %v1483_v63  ;;  %v789_v34 = vmul.f32 %v2949_v50, %v3118_v5  ;;  %v1128_v63 = vmul.f32 %v2977_v18, %v993_v58 }
 0x2cf   :  { %v1491_v22 = vpack.c.bf16 %v1262_v4, %v1260_v7  ;;  %v1232_v60 = vpop.xlane.xlu1 %1231  ;;  %v1112_v7 = vmul.f32 %v2977_v18, %v977_v10  ;;  %v3418_v4 = vsub.s32 %v1761_v29, %v4128_v16  ;;  %v1202_v10 = vmul.f32 %v2977_v18, %v1067_v32 }
 0x2d0   :  { %v1746_v37 = vrot.slane %v1613_v40, %v3396_v26  ;;  %v1751_v5 = vrot.slane %v1614_v59, %v3402_v47  ;;  %v895_v43 = vadd.f32 %v2958_v56, %v760_v42  ;;  %v790_v29 = vmul.f32 %v2949_v50, %v3129_v30 }
 0x2d1   :  { %1373 = vadd.xlane.f32.xlu0 %v1172_v44  ;;  %v1630_v23 = vunpack.c.h.b16 %v1491_v22  ;;  %v819_v42 = vmul.f32 %v2949_v50, %v3131_v15 }
 0x2d2   :  { %1431 = vadd.xlane.f32.xlu1 %v1201_v6  ;;  %v1234_v48 = vpop.xlane.xlu0 %1233  ;;  %v1629_v6 = vunpack.c.l.b16 %v1491_v22  ;;  %v1753_v38 = vsel %vm1752_vm1, %v1751_v5, %v1746_v37  ;;  %v3446_v37 = vld [vmem:[%s4072_s2] ss:$0 sm:$0xff] }
 0x2d3   :  { %v1484_v45 = vpack.c.bf16 %v1234_v48, %v1232_v60  ;;  %v1264_v44 = vpop.xlane.xlu1 %1263  ;;  %v924_v60 = vadd.f32 %v2958_v56, %v789_v34  ;;  %v1859_v30 = vrot.slane %v1630_v23, %v3402_v47  ;;  %v4130_v56 = vld [vmem:[#allocation28_spill] sm:$0xff] }
 0x2d4   :  { %v1855_v48 = vrot.slane %v1629_v6, %v3396_v26 }
 0x2d5   :  { %v1615_v58 = vunpack.c.l.b16 %v1484_v45  ;;  %v1616_v21 = vunpack.c.h.b16 %v1484_v45  ;;  %1433 = vadd.xlane.f32.xlu0 %v1202_v10  ;;  %v1052_v6 = vmax.f32 %v924_v60, 0.0 }
 0x2d6   :  { %1251 = vadd.xlane.f32.xlu1 %v1111_v31  ;;  %v1266_v18 = vpop.xlane.xlu0 %1265  ;;  %v745_v31 = vmul.f32 %v2949_v50, %v4130_v56  ;;  %v820_v50 = vmul.f32 %v3446_v37, %v3144_v62  ;;  %v3462_v62 = vld [vmem:[%s4074_s4] ss:$0 sm:$0xff] }
 0x2d7   :  { %v1758_v32 = vrot.slane %v1615_v58, %v3415_v1  ;;  %v1765_v22 = vrot.slane %v1616_v21, %v3418_v4  ;;  %v1492_v40 = vpack.c.bf16 %v1266_v18, %v1264_v44  ;;  %v1292_v59 = vpop.xlane.xlu1 %1291  ;;  %v1023_v21 = vmax.f32 %v895_v43, 0.0  ;;  %v3440_v44 = vld [vmem:[%s4073_s3] ss:$0 sm:$0xff]  ;;  %v4131_v18 = vld [vmem:[#allocation27_spill] sm:$0xff] }
 0x2d8   :  { %v925_v15 = vadd.f32 %v3440_v44, %v790_v29  ;;  %v880_v60 = vadd.f32 %v3440_v44, %v745_v31 }
 0x2d9   :  { %v1760_v34 = vsel %vm1759_vm2, %v1758_v32, %v1753_v38  ;;  %v1631_v45 = vunpack.c.l.b16 %v1492_v40  ;;  %v1632_v10 = vunpack.c.h.b16 %v1492_v40  ;;  %1253 = vadd.xlane.f32.xlu0 %v1112_v7  ;;  %v746_v32 = vmul.f32 %v3446_v37, %v4131_v18 }
 0x2da   :  { %v3451_v5 = vsel %vm1766_vm3, %v1765_v22, %v1760_v34  ;;  %1283 = vadd.xlane.f32.xlu1 %v1127_v57  ;;  %v1294_v7 = vpop.xlane.xlu0 %1293  ;;  %v954_v40 = vadd.f32 %v3440_v44, %v819_v42  ;;  %v1860_v38 = vsel %vm1752_vm1, %v1859_v30, %v1855_v48  ;;  %v1157_v57 = vmul.f32 %v3462_v62, %v1022_v49  ;;  %v4132_v34 = vld [vmem:[#allocation17_spill] sm:$0xff] }
 0x2db   :  { %v1864_v23 = vrot.slane %v1631_v45, %v3415_v1  ;;  %v1869_v43 = vrot.slane %v1632_v10, %v3418_v4  ;;  %v1499_v58 = vpack.c.bf16 %v1294_v7, %v1292_v59  ;;  %v1296_v29 = vpop.xlane.xlu1 %1295  ;;  %v716_v45 = vmul.f32 %v3446_v37, %v4132_v34  ;;  %v4133_v7 = vld [vmem:[#allocation18_spill] sm:$0xff] }
 0x2dc   :  { %v1053_v42 = vmax.f32 %v925_v15, 0.0  ;;  %v955_v48 = vadd.f32 %v3440_v44, %v820_v50  ;;  %v715_v49 = vmul.f32 %v3446_v37, %v4133_v7  ;;  %v775_v15 = vmul.f32 %v3446_v37, %v3150_v11 }
 0x2dd   :  { %v1865_v22 = vsel %vm1759_vm2, %v1864_v23, %v1860_v38  ;;  %v1645_v59 = vunpack.c.l.b16 %v1499_v58  ;;  %v1646_v56 = vunpack.c.h.b16 %v1499_v58  ;;  %1285 = vadd.xlane.f32.xlu0 %v1128_v63  ;;  %v1158_v23 = vmul.f32 %v3462_v62, %v1023_v21 }
 0x2de   :  { %v3471_v30 = vsel %vm1766_vm3, %v1869_v43, %v1865_v22  ;;  %1343 = vadd.xlane.f32.xlu1 %v1157_v57  ;;  %v1298_v10 = vpop.xlane.xlu0 %1297  ;;  %v1187_v63 = vmul.f32 %v3462_v62, %v1052_v6  ;;  %v1082_v58 = vmax.f32 %v954_v40, 0.0  ;;  %v881_v38 = vadd.f32 %v3440_v44, %v746_v32 }
 0x2df   :  { %v1500_v31 = vpack.c.bf16 %v1298_v10, %v1296_v29  ;;  %v1324_v18 = vpop.xlane.xlu1 %1323  ;;  %v1934_v50 = vrot.slane %v1645_v59, %v3396_v26  ;;  %v1938_v43 = vrot.slane %v1646_v56, %v3402_v47  ;;  %v1008_v57 = vmax.f32 %v880_v60, 0.0 }
 0x2e0   :  { %v1083_v29 = vmax.f32 %v955_v48, 0.0  ;;  %v776_v21 = vmul.f32 %v3446_v37, %v3161_v55  ;;  %v1188_v40 = vmul.f32 %v3462_v62, %v1053_v42  ;;  %v1768_v11 = vadd.s32 4294967264, %v3382_v54 }
 0x2e1   :  { %v1647_v22 = vunpack.c.l.b16 %v1500_v31  ;;  %v1648_v34 = vunpack.c.h.b16 %v1500_v31  ;;  %1345 = vadd.xlane.f32.xlu0 %v1158_v23  ;;  %v1775_v60 = vadd.s32 4294967256, %v3382_v54  ;;  %v910_v48 = vadd.f32 %v3440_v44, %v775_v15 }
 0x2e2   :  { %1403 = vadd.xlane.f32.xlu1 %v1187_v63  ;;  %v1326_v6 = vpop.xlane.xlu0 %1325  ;;  %v805_v55 = vmul.f32 %v3446_v37, %v3163_v13  ;;  %v1939_v7 = vsel %vm1752_vm1, %v1938_v43, %v1934_v50  ;;  %v1217_v42 = vmul.f32 %v3462_v62, %v1082_v58  ;;  %v3497_v31 = vadd.f32 %v3440_v44, %v716_v45 }
 0x2e3   :  { %v1943_v59 = vrot.slane %v1647_v22, %v3415_v1  ;;  %v1948_v56 = vrot.slane %v1648_v34, %v3418_v4  ;;  %v3488_v10 = vpack.c.bf16 %v1326_v6, %v1324_v18  ;;  %v1236_v32 = vpop.xlane.xlu1 %1235  ;;  %v1009_v18 = vmax.f32 %v881_v38, 0.0 }
 0x2e4   :  { %v911_v63 = vadd.f32 %v3440_v44, %v776_v21  ;;  %v806_v22 = vmul.f32 %v3446_v37, %v3176_v52  ;;  %v3507_v50 = vsub.s32 %v1768_v11, %v4128_v16  ;;  %v3510_v45 = vsub.s32 %v1775_v60, %v4128_v16  ;;  %v4135_v11 = vld [vmem:[#allocation24_spill] sm:$0xff] }
 0x2e5   :  { %v1944_v23 = vsel %vm1759_vm2, %v1943_v59, %v1939_v7  ;;  %1405 = vadd.xlane.f32.xlu0 %v1188_v40  ;;  %v1218_v38 = vmul.f32 %v3462_v62, %v1083_v29  ;;  %v3514_v34 = vadd.f32 %v3440_v44, %v715_v49  ;;  %v1038_v21 = vmax.f32 %v910_v48, 0.0  ;;  %v4134_v40 = vld [vmem:[#allocation23_spill] sm:$0xff] }
 0x2e6   :  { %v3504_v15 = vsel %vm1766_vm3, %v1948_v56, %v1944_v23  ;;  %1463 = vadd.xlane.f32.xlu1 %v1217_v42  ;;  %v1238_v13 = vpop.xlane.xlu0 %1237  ;;  %v940_v52 = vadd.f32 %v3440_v44, %v805_v55  ;;  %v1143_v6 = vmul.f32 %v3462_v62, %v1008_v57  ;;  %v732_v59 = vmul.f32 %v3446_v37, %v4134_v40 }
 0x2e7   :  { %v1485_v58 = vpack.c.bf16 %v1238_v13, %v1236_v32  ;;  %v1268_v43 = vpop.xlane.xlu1 %1267  ;;  %v731_v56 = vmul.f32 %v3446_v37, %v4135_v11  ;;  %v1039_v32 = vmax.f32 %v911_v63, 0.0  ;;  %v941_v29 = vadd.f32 %v3440_v44, %v806_v22 }
 0x2e8   :  { %v1144_v48 = vmul.f32 %v3462_v62, %v1009_v18  ;;  %v1068_v13 = vmax.f32 %v940_v52, 0.0  ;;  %v1661_v40 = vunpack.c.l.b16 %v3488_v10  ;;  %v1173_v63 = vmul.f32 %v3462_v62, %v1038_v21 }
 0x2e9   :  { %v1617_v60 = vunpack.c.l.b16 %v1485_v58  ;;  %v1618_v7 = vunpack.c.h.b16 %v1485_v58  ;;  %1465 = vadd.xlane.f32.xlu0 %v1218_v38  ;;  %v1662_v58 = vunpack.c.h.b16 %v3488_v10  ;;  %v978_v22 = vmax.f32 %v3514_v34, 0.0 }
 0x2ea   :  { %1315 = vadd.xlane.f32.xlu1 %v1143_v6  ;;  %v1270_v49 = vpop.xlane.xlu0 %1269  ;;  %v866_v11 = vadd.f32 %v3440_v44, %v731_v56  ;;  %v1174_v21 = vmul.f32 %v3462_v62, %v1039_v32  ;;  %v2013_v56 = vrot.slane %v1661_v40, %v3396_v26 }
 0x2eb   :  { %v1772_v57 = vrot.slane %v1617_v60, %v3507_v50  ;;  %v1779_v55 = vrot.slane %v1618_v7, %v3510_v45  ;;  %v1493_v42 = vpack.c.bf16 %v1270_v49, %v1268_v43  ;;  %v1328_v23 = vpop.xlane.xlu1 %1327  ;;  %v4136_v60 = vld [vmem:[#allocation36_spill] sm:$0xff]  ;;  %v1069_v7 = vmax.f32 %v941_v29, 0.0 }
 0x2ec   :  { %v761_v43 = vmul.f32 %v3446_v37, %v4136_v60 }
 0x2ed   :  { %v1774_v38 = vsel %vm1773_vm4, %v1772_v57, %v3451_v5  ;;  %v1633_v18 = vunpack.c.l.b16 %v1493_v42  ;;  %v1634_v6 = vunpack.c.h.b16 %v1493_v42  ;;  %1317 = vadd.xlane.f32.xlu0 %v1144_v48  ;;  %v867_v48 = vadd.f32 %v3440_v44, %v732_v59 }
 0x2ee   :  { %v3536_v52 = vsel %vm1780_vm5, %v1779_v55, %v1774_v38  ;;  %1375 = vadd.xlane.f32.xlu1 %v1173_v63  ;;  %v1330_v10 = vpop.xlane.xlu0 %1329  ;;  %v2017_v42 = vrot.slane %v1662_v58, %v3402_v47  ;;  %v1203_v55 = vmul.f32 %v3462_v62, %v1068_v13  ;;  %v4137_v38 = vld [vmem:[#allocation35_spill] sm:$0xff]  ;;  %v896_v59 = vadd.f32 %v3440_v44, %v761_v43 }
 0x2ef   :  { %v1874_v34 = vrot.slane %v1633_v18, %v3507_v50  ;;  %v1879_v5 = vrot.slane %v1634_v6, %v3510_v45  ;;  %v1508_v49 = vpack.c.bf16 %v1330_v10, %v1328_v23  ;;  %v1356_v57 = vpop.xlane.xlu1 %1355  ;;  %v762_v63 = vmul.f32 %v3446_v37, %v4137_v38 }
 0x2f0   :  { %v979_v23 = vmax.f32 %v3497_v31, 0.0  ;;  %v994_v6 = vmax.f32 %v866_v11, 0.0  ;;  %v2018_v31 = vsel %vm1752_vm1, %v2017_v42, %v2013_v56  ;;  %v1113_v11 = vmul.f32 %v3462_v62, %v978_v22 }
 0x2f1   :  { %v1875_v32 = vsel %vm1773_vm4, %v1874_v34, %v3471_v30  ;;  %v1663_v29 = vunpack.c.l.b16 %v1508_v49  ;;  %v1664_v18 = vunpack.c.h.b16 %v1508_v49  ;;  %1377 = vadd.xlane.f32.xlu0 %v1174_v21  ;;  %v1204_v30 = vmul.f32 %v3462_v62, %v1069_v7  ;;  %v4138_v49 = vld [vmem:[#allocation29_spill] sm:$0xff] }
 0x2f2   :  { %v3552_v40 = vsel %vm1780_vm5, %v1879_v5, %v1875_v32  ;;  %1435 = vadd.xlane.f32.xlu1 %v1203_v55  ;;  %v1358_v58 = vpop.xlane.xlu0 %1357  ;;  %v791_v21 = vmul.f32 %v3446_v37, %v3182_v51  ;;  %v995_v43 = vmax.f32 %v867_v48, 0.0  ;;  %v897_v34 = vadd.f32 %v3440_v44, %v762_v63 }
 0x2f3   :  { %v2022_v13 = vrot.slane %v1663_v29, %v3415_v1  ;;  %v2027_v60 = vrot.slane %v1664_v18, %v3418_v4  ;;  %v1515_v10 = vpack.c.bf16 %v1358_v58, %v1356_v57  ;;  %v1300_v38 = vpop.xlane.xlu1 %1299  ;;  %v748_v55 = vmul.f32 %v3446_v37, %v4138_v49  ;;  %v4139_v57 = vld [vmem:[#allocation30_spill] sm:$0xff] }
 0x2f4   :  { %v747_v32 = vmul.f32 %v3446_v37, %v4139_v57  ;;  %v792_v7 = vmul.f32 %v3446_v37, %v3193_v27  ;;  %v1024_v48 = vmax.f32 %v896_v59, 0.0  ;;  %v1114_v63 = vmul.f32 %v3462_v62, %v979_v23 }
 0x2f5   :  { %v2023_v5 = vsel %vm1759_vm2, %v2022_v13, %v2018_v31  ;;  %1437 = vadd.xlane.f32.xlu0 %v1204_v30  ;;  %v1129_v29 = vmul.f32 %v3462_v62, %v994_v6  ;;  %v926_v18 = vadd.f32 %v3440_v44, %v791_v21  ;;  %v821_v58 = vmul.f32 %v3446_v37, %v3195_v25 }
 0x2f6   :  { %v3570_v51 = vsel %vm1766_vm3, %v2027_v60, %v2023_v5  ;;  %1255 = vadd.xlane.f32.xlu1 %v1113_v11  ;;  %v1302_v22 = vpop.xlane.xlu0 %1301  ;;  %v1677_v13 = vunpack.c.l.b16 %v1515_v10  ;;  %v1678_v30 = vunpack.c.h.b16 %v1515_v10  ;;  %v1025_v27 = vmax.f32 %v897_v34, 0.0 }
 0x2f7   :  { %v1501_v56 = vpack.c.bf16 %v1302_v22, %v1300_v38  ;;  %v1360_v42 = vpop.xlane.xlu1 %1359  ;;  %v1130_v11 = vmul.f32 %v3462_v62, %v995_v43  ;;  %v3579_v59 = vadd.f32 %v3440_v44, %v748_v55  ;;  %v882_v23 = vadd.f32 %v3440_v44, %v747_v32 }
 0x2f8   :  { %v927_v6 = vadd.f32 %v3440_v44, %v792_v7  ;;  %v822_v38 = vmul.f32 %v3446_v37, %v3208_v3  ;;  %v1159_v43 = vmul.f32 %v3462_v62, %v1024_v48  ;;  %v1054_v49 = vmax.f32 %v926_v18, 0.0 }
 0x2f9   :  { %v1649_v31 = vunpack.c.l.b16 %v1501_v56  ;;  %v1650_v60 = vunpack.c.h.b16 %v1501_v56  ;;  %1257 = vadd.xlane.f32.xlu0 %v1114_v63  ;;  %v956_v55 = vadd.f32 %v3440_v44, %v821_v58  ;;  %v2092_v57 = vrot.slane %v1677_v13, %v3396_v26 }
 0x2fa   :  { %1287 = vadd.xlane.f32.xlu1 %v1129_v29  ;;  %v1362_v25 = vpop.xlane.xlu0 %1361  ;;  %v2096_v32 = vrot.slane %v1678_v30, %v3402_v47  ;;  %v1160_v56 = vmul.f32 %v3462_v62, %v1025_v27  ;;  %v1055_v63 = vmax.f32 %v927_v6, 0.0  ;;  %v1782_v18 = vadd.s32 4294967248, %v3382_v54 }
 0x2fb   :  { %v1953_v10 = vrot.slane %v1649_v31, %v3507_v50  ;;  %v1958_v21 = vrot.slane %v1650_v60, %v3510_v45  ;;  %v1516_v34 = vpack.c.bf16 %v1362_v25, %v1360_v42  ;;  %v1388_v5 = vpop.xlane.xlu1 %1387  ;;  %v957_v42 = vadd.f32 %v3440_v44, %v822_v38  ;;  %v4140_v25 = vld [vmem:[#allocation38_spill] sm:$0xff] }
 0x2fc   :  { %v1789_v31 = vadd.s32 4294967240, %v3382_v54  ;;  %v1084_v27 = vmax.f32 %v956_v55, 0.0  ;;  %v777_v60 = vmul.f32 %v3446_v37, %v3214_v53  ;;  %v1189_v6 = vmul.f32 %v3462_v62, %v1054_v49 }
 0x2fd   :  { %v1954_v3 = vsel %vm1773_vm4, %v1953_v10, %v3504_v15  ;;  %v1679_v7 = vunpack.c.l.b16 %v1516_v34  ;;  %v1680_v22 = vunpack.c.h.b16 %v1516_v34  ;;  %1289 = vadd.xlane.f32.xlu0 %v1130_v11  ;;  %v2097_v11 = vsel %vm1752_vm1, %v2096_v32, %v2092_v57 }
 0x2fe   :  { %v3596_v48 = vsel %vm1780_vm5, %v1958_v21, %v1954_v3  ;;  %1347 = vadd.xlane.f32.xlu1 %v1159_v43  ;;  %v1390_v29 = vpop.xlane.xlu0 %1389  ;;  %v1010_v38 = vmax.f32 %v882_v23, 0.0  ;;  %v763_v10 = vmul.f32 %v3446_v37, %v4140_v25  ;;  %v1011_v34 = vmax.f32 %v3579_v59, 0.0  ;;  %v4141_v59 = vld [vmem:[#allocation37_spill] sm:$0xff] }
 0x2ff   :  { %v2101_v58 = vrot.slane %v1679_v7, %v3415_v1  ;;  %v2106_v13 = vrot.slane %v1680_v22, %v3418_v4  ;;  %v3601_v15 = vpack.c.bf16 %v1390_v29, %v1388_v5  ;;  %v1240_v30 = vpop.xlane.xlu1 %1239  ;;  %v1085_v5 = vmax.f32 %v957_v42, 0.0 }
 0x300   :  { %v778_v43 = vmul.f32 %v3446_v37, %v3225_v19  ;;  %v3618_v49 = vsub.s32 %v1782_v18, %v4128_v16  ;;  %v3621_v23 = vsub.s32 %v1789_v31, %v4128_v16  ;;  %v1190_v3 = vmul.f32 %v3462_v62, %v1055_v63 }
 0x301   :  { %v2102_v21 = vsel %vm1759_vm2, %v2101_v58, %v2097_v11  ;;  %1349 = vadd.xlane.f32.xlu0 %v1160_v56  ;;  %v764_v7 = vmul.f32 %v3446_v37, %v4141_v59  ;;  %v912_v19 = vadd.f32 %v3440_v44, %v777_v60  ;;  %v807_v22 = vmul.f32 %v3446_v37, %v3227_v33 }
 0x302   :  { %v3615_v55 = vsel %vm1766_vm3, %v2106_v13, %v2102_v21  ;;  %1407 = vadd.xlane.f32.xlu1 %v1189_v6  ;;  %v1242_v53 = vpop.xlane.xlu0 %1241  ;;  %v1219_v56 = vmul.f32 %v3462_v62, %v1084_v27  ;;  %v3631_v42 = vadd.f32 %v3440_v44, %v763_v10  ;;  %v1145_v58 = vmul.f32 %v3462_v62, %v1010_v38 }
 0x303   :  { %v1486_v57 = vpack.c.bf16 %v1242_v53, %v1240_v30  ;;  %v1272_v32 = vpop.xlane.xlu1 %1271  ;;  %v913_v63 = vadd.f32 %v3440_v44, %v778_v43  ;;  %v808_v13 = vmul.f32 %v3446_v37, %v3240_v39  ;;  %v1220_v33 = vmul.f32 %v3462_v62, %v1085_v5 }
 0x304   :  { %v3641_v6 = vadd.f32 %v3440_v44, %v764_v7  ;;  %v1040_v38 = vmax.f32 %v912_v19, 0.0  ;;  %v942_v25 = vadd.f32 %v3440_v44, %v807_v22  ;;  %v1146_v39 = vmul.f32 %v3462_v62, %v1011_v34 }
 0x305   :  { %v1619_v29 = vunpack.c.l.b16 %v1486_v57  ;;  %v1620_v18 = vunpack.c.h.b16 %v1486_v57  ;;  %1409 = vadd.xlane.f32.xlu0 %v1190_v3  ;;  %v1026_v10 = vmax.f32 %v3631_v42, 0.0  ;;  %v1041_v53 = vmax.f32 %v913_v63, 0.0 }
 0x306   :  { %1467 = vadd.xlane.f32.xlu1 %v1219_v56  ;;  %v1274_v30 = vpop.xlane.xlu0 %1273  ;;  %v943_v57 = vadd.f32 %v3440_v44, %v808_v13  ;;  %v793_v34 = vmul.f32 %v3446_v37, %v3246_v8  ;;  %v1070_v56 = vmax.f32 %v942_v25, 0.0  ;;  %v1693_v42 = vunpack.c.l.b16 %v3601_v15 }
 0x307   :  { %v1786_v31 = vrot.slane %v1619_v29, %v3618_v49  ;;  %v1793_v27 = vrot.slane %v1620_v18, %v3621_v23  ;;  %v1494_v60 = vpack.c.bf16 %v1274_v30, %v1272_v32  ;;  %v1332_v11 = vpop.xlane.xlu1 %1331  ;;  %v794_v32 = vmul.f32 %v3446_v37, %v3257_v35 }
 0x308   :  { %v1694_v29 = vunpack.c.h.b16 %v3601_v15  ;;  %v1175_v35 = vmul.f32 %v3462_v62, %v1040_v38  ;;  %v823_v18 = vmul.f32 %v3446_v37, %v3259_v20  ;;  %v1071_v13 = vmax.f32 %v943_v57, 0.0 }
 0x309   :  { %v1788_v21 = vsel %vm1787_vm6, %v1786_v31, %v3536_v52  ;;  %v1635_v5 = vunpack.c.l.b16 %v1494_v60  ;;  %v1636_v43 = vunpack.c.h.b16 %v1494_v60  ;;  %1469 = vadd.xlane.f32.xlu0 %v1220_v33  ;;  %v929_v30 = vadd.f32 %v3440_v44, %v794_v32 }
 0x30a   :  { %v3652_v3 = vsel %vm1794_vm7, %v1793_v27, %v1788_v21  ;;  %1319 = vadd.xlane.f32.xlu1 %v1145_v58  ;;  %v1334_v59 = vpop.xlane.xlu0 %1333  ;;  %v1176_v15 = vmul.f32 %v3462_v62, %v1041_v53  ;;  %v928_v27 = vadd.f32 %v3440_v44, %v793_v34  ;;  %v824_v38 = vmul.f32 %v3446_v37, %v3272_v0 }
 0x30b   :  { %v1884_v7 = vrot.slane %v1635_v5, %v3618_v49  ;;  %v1889_v52 = vrot.slane %v1636_v43, %v3621_v23  ;;  %v1509_v19 = vpack.c.bf16 %v1334_v59, %v1332_v11  ;;  %v1392_v22 = vpop.xlane.xlu1 %1391  ;;  %v2171_v25 = vrot.slane %v1693_v42, %v3396_v26 }
 0x30c   :  { %v1205_v21 = vmul.f32 %v3462_v62, %v1070_v56  ;;  %v958_v5 = vadd.f32 %v3440_v44, %v823_v18  ;;  %v1027_v32 = vmax.f32 %v3641_v6, 0.0  ;;  %v780_v59 = vmul.f32 %v3446_v37, %v3289_v28 }
 0x30d   :  { %v1885_v58 = vsel %vm1787_vm6, %v1884_v7, %v3552_v40  ;;  %v1665_v8 = vunpack.c.l.b16 %v1509_v19  ;;  %v1666_v63 = vunpack.c.h.b16 %v1509_v19  ;;  %1321 = vadd.xlane.f32.xlu0 %v1146_v39  ;;  %v2175_v39 = vrot.slane %v1694_v29, %v3402_v47 }
 0x30e   :  { %v3667_v33 = vsel %vm1794_vm7, %v1889_v52, %v1885_v58  ;;  %1379 = vadd.xlane.f32.xlu1 %v1175_v35  ;;  %v1394_v31 = vpop.xlane.xlu0 %1393  ;;  %v779_v0 = vmul.f32 %v3446_v37, %v3278_v17  ;;  %v1206_v56 = vmul.f32 %v3462_v62, %v1071_v13  ;;  %v1056_v6 = vmax.f32 %v928_v27, 0.0 }
 0x30f   :  { %v2032_v20 = vrot.slane %v1665_v8, %v3507_v50  ;;  %v2037_v60 = vrot.slane %v1666_v63, %v3510_v45  ;;  %v1524_v40 = vpack.c.bf16 %v1394_v31, %v1392_v22  ;;  %v1420_v11 = vpop.xlane.xlu1 %1419  ;;  %v959_v42 = vadd.f32 %v3440_v44, %v824_v38 }
 0x310   :  { %v2176_v28 = vsel %vm1752_vm1, %v2175_v39, %v2171_v25  ;;  %v1161_v17 = vmul.f32 %v3462_v62, %v1026_v10  ;;  %v1057_v29 = vmax.f32 %v929_v30, 0.0  ;;  %v1086_v35 = vmax.f32 %v958_v5, 0.0 }
 0x311   :  { %v2033_v43 = vsel %vm1773_vm4, %v2032_v20, %v3570_v51  ;;  %v1695_v53 = vunpack.c.l.b16 %v1524_v40  ;;  %v1696_v57 = vunpack.c.h.b16 %v1524_v40  ;;  %1381 = vadd.xlane.f32.xlu0 %v1176_v15  ;;  %v915_v58 = vadd.f32 %v3440_v44, %v780_v59 }
 0x312   :  { %v3687_v34 = vsel %vm1780_vm5, %v2037_v60, %v2033_v43  ;;  %1439 = vadd.xlane.f32.xlu1 %v1205_v21  ;;  %v1422_v7 = vpop.xlane.xlu0 %1421  ;;  %v914_v8 = vadd.f32 %v3440_v44, %v779_v0  ;;  %v809_v63 = vmul.f32 %v3446_v37, %v3291_v2  ;;  %v810_v10 = vmul.f32 %v3446_v37, %v3304_v14 }
 0x313   :  { %v2180_v52 = vrot.slane %v1695_v53, %v3415_v1  ;;  %v2185_v51 = vrot.slane %v1696_v57, %v3418_v4  ;;  %v1531_v19 = vpack.c.bf16 %v1422_v7, %v1420_v11  ;;  %v1304_v22 = vpop.xlane.xlu1 %1303  ;;  %v1162_v27 = vmul.f32 %v3462_v62, %v1027_v32 }
 0x314   :  { %v1087_v20 = vmax.f32 %v959_v42, 0.0  ;;  %v1191_v60 = vmul.f32 %v3462_v62, %v1056_v6  ;;  %v1192_v2 = vmul.f32 %v3462_v62, %v1057_v29  ;;  %v1043_v38 = vmax.f32 %v915_v58, 0.0 }
 0x315   :  { %v2181_v18 = vsel %vm1759_vm2, %v2180_v52, %v2176_v28  ;;  %1441 = vadd.xlane.f32.xlu0 %v1206_v56  ;;  %v1042_v25 = vmax.f32 %v914_v8, 0.0  ;;  %v944_v39 = vadd.f32 %v3440_v44, %v809_v63  ;;  %v1221_v14 = vmul.f32 %v3462_v62, %v1086_v35 }
 0x316   :  { %v3701_v13 = vsel %vm1766_vm3, %v2185_v51, %v2181_v18  ;;  %1351 = vadd.xlane.f32.xlu1 %v1161_v17  ;;  %v1306_v31 = vpop.xlane.xlu0 %1305  ;;  %v945_v5 = vadd.f32 %v3440_v44, %v810_v10  ;;  %v795_v59 = vmul.f32 %v3446_v37, %v3310_v41  ;;  %v1709_v0 = vunpack.c.l.b16 %v1531_v19 }
 0x317   :  { %v1502_v30 = vpack.c.bf16 %v1306_v31, %v1304_v22  ;;  %v1364_v15 = vpop.xlane.xlu1 %1363  ;;  %v1710_v7 = vunpack.c.h.b16 %v1531_v19  ;;  %v1222_v52 = vmul.f32 %v3462_v62, %v1087_v20  ;;  %v796_v51 = vmul.f32 %v3446_v37, %v3321_v12 }
 0x318   :  { %v1072_v42 = vmax.f32 %v944_v39, 0.0  ;;  %v1177_v41 = vmul.f32 %v3462_v62, %v1042_v25  ;;  %v1178_v19 = vmul.f32 %v3462_v62, %v1043_v38  ;;  %v1073_v29 = vmax.f32 %v945_v5, 0.0 }
 0x319   :  { %v1651_v40 = vunpack.c.l.b16 %v1502_v30  ;;  %v1652_v11 = vunpack.c.h.b16 %v1502_v30  ;;  %1353 = vadd.xlane.f32.xlu0 %v1162_v27  ;;  %v930_v58 = vadd.f32 %v3440_v44, %v795_v59  ;;  %v825_v8 = vmul.f32 %v3446_v37, %v3323_v24 }
 0x31a   :  { %1411 = vadd.xlane.f32.xlu1 %v1191_v60  ;;  %v1366_v21 = vpop.xlane.xlu0 %1365  ;;  %v2250_v63 = vrot.slane %v1709_v0, %v3396_v26  ;;  %v2254_v31 = vrot.slane %v1710_v7, %v3402_v47  ;;  %v931_v10 = vadd.f32 %v3440_v44, %v796_v51  ;;  %v826_v20 = vmul.f32 %v3446_v37, %v3336_v61 }
 0x31b   :  { %v1963_v43 = vrot.slane %v1651_v40, %v3618_v49  ;;  %v1968_v53 = vrot.slane %v1652_v11, %v3621_v23  ;;  %v1517_v57 = vpack.c.bf16 %v1366_v21, %v1364_v15  ;;  %v1424_v32 = vpop.xlane.xlu1 %1423  ;;  %v1207_v40 = vmul.f32 %v3462_v62, %v1072_v42 }
 0x31c   :  { %v1796_v11 = vadd.s32 4294967232, %v3382_v54  ;;  %v1803_v39 = vadd.s32 4294967224, %v3382_v54  ;;  %v1058_v21 = vmax.f32 %v930_v58, 0.0  ;;  %v960_v61 = vadd.f32 %v3440_v44, %v825_v8 }
 0x31d   :  { %v1964_v22 = vsel %vm1787_vm6, %v1963_v43, %v3596_v48  ;;  %v1681_v56 = vunpack.c.l.b16 %v1517_v57  ;;  %v1682_v6 = vunpack.c.h.b16 %v1517_v57  ;;  %1413 = vadd.xlane.f32.xlu0 %v1192_v2  ;;  %v2255_v5 = vsel %vm1752_vm1, %v2254_v31, %v2250_v63 }
 0x31e   :  { %v3721_v28 = vsel %vm1794_vm7, %v1968_v53, %v1964_v22  ;;  %1471 = vadd.xlane.f32.xlu1 %v1221_v14  ;;  %v1426_v17 = vpop.xlane.xlu0 %1425  ;;  %v811_v14 = vmul.f32 %v3446_v37, %v3342_v9  ;;  %v1059_v43 = vmax.f32 %v931_v10, 0.0  ;;  %v961_v57 = vadd.f32 %v3440_v44, %v826_v20 }
 0x31f   :  { %v2111_v35 = vrot.slane %v1681_v56, %v3507_v50  ;;  %v2116_v12 = vrot.slane %v1682_v6, %v3510_v45  ;;  %v1532_v18 = vpack.c.bf16 %v1426_v17, %v1424_v32  ;;  %v1452_v48 = vpop.xlane.xlu1 %1451  ;;  %v812_v32 = vmul.f32 %v3446_v37, %v3353_v46 }
 0x320   :  { %v3759_v7 = vsub.s32 %v1796_v11, %v4128_v16  ;;  %v3762_v9 = vsub.s32 %v1803_v39, %v4128_v16  ;;  %v1208_v22 = vmul.f32 %v3462_v62, %v1073_v29  ;;  %v1088_v56 = vmax.f32 %v960_v61, 0.0 }
 0x321   :  { %v2112_v30 = vsel %vm1773_vm4, %v2111_v35, %v3615_v55  ;;  %v1711_v15 = vunpack.c.l.b16 %v1532_v18  ;;  %v1712_v27 = vunpack.c.h.b16 %v1532_v18  ;;  %1473 = vadd.xlane.f32.xlu0 %v1222_v52  ;;  %v946_v6 = vadd.f32 %v3440_v44, %v811_v14  ;;  %v4142_v18 = vld [vmem:[#allocation39_spill] sm:$0xff] }
 0x322   :  { %v3738_v60 = vsel %vm1780_vm5, %v2116_v12, %v2112_v30  ;;  %1383 = vadd.xlane.f32.xlu1 %v1177_v41  ;;  %v1454_v24 = vpop.xlane.xlu0 %1453  ;;  %v827_v46 = vmul.f32 %v3446_v37, %v3357_v36  ;;  %v1193_v42 = vmul.f32 %v3462_v62, %v1058_v21  ;;  %v1089_v35 = vmax.f32 %v961_v57, 0.0 }
 0x323   :  { %v2259_v2 = vrot.slane %v1711_v15, %v3415_v1  ;;  %v2264_v38 = vrot.slane %v1712_v27, %v3418_v4  ;;  %v3744_v55 = vpack.c.bf16 %v1454_v24, %v1452_v48  ;;  %v1244_v25 = vpop.xlane.xlu1 %1243  ;;  %v947_v12 = vadd.f32 %v3440_v44, %v812_v32 }
 0x324   :  { %v828_v48 = vmul.f32 %v3446_v37, %v4142_v18  ;;  %v1074_v31 = vmax.f32 %v946_v6, 0.0  ;;  %v962_v10 = vadd.f32 %v3440_v44, %v827_v46  ;;  %v1223_v30 = vmul.f32 %v3462_v62, %v1088_v56 }
 0x325   :  { %v2260_v53 = vsel %vm1759_vm2, %v2259_v2, %v2255_v5  ;;  %1385 = vadd.xlane.f32.xlu0 %v1178_v19  ;;  %v1194_v19 = vmul.f32 %v3462_v62, %v1059_v43  ;;  %v1075_v20 = vmax.f32 %v947_v12, 0.0  ;;  %v1224_v11 = vmul.f32 %v3462_v62, %v1089_v35 }
 0x326   :  { %v3756_v59 = vsel %vm1766_vm3, %v2264_v38, %v2260_v53  ;;  %1443 = vadd.xlane.f32.xlu1 %v1207_v40  ;;  %v1246_v0 = vpop.xlane.xlu0 %1245  ;;  %v963_v2 = vadd.f32 %v3440_v44, %v828_v48  ;;  %v1209_v61 = vmul.f32 %v3462_v62, %v1074_v31  ;;  %v1725_v56 = vunpack.c.l.b16 %v3744_v55 }
 0x327   :  { %v1487_v52 = vpack.c.bf16 %v1246_v0, %v1244_v25  ;;  %v1276_v51 = vpop.xlane.xlu1 %1275  ;;  %v1210_v57 = vmul.f32 %v3462_v62, %v1075_v20 }
 0x328   :  { %v1091_v32 = vmax.f32 %v963_v2, 0.0 }
 0x329   :  { %v1621_v17 = vunpack.c.l.b16 %v1487_v52  ;;  %v1622_v41 = vunpack.c.h.b16 %v1487_v52  ;;  %1445 = vadd.xlane.f32.xlu0 %v1208_v22 }
 0x32a   :  { %1415 = vadd.xlane.f32.xlu1 %v1193_v42  ;;  %v1278_v29 = vpop.xlane.xlu0 %1277 }
 0x32b   :  { %v1800_v58 = vrot.slane %v1621_v17, %v3759_v7  ;;  %v1807_v36 = vrot.slane %v1622_v41, %v3762_v9  ;;  %v1495_v8 = vpack.c.bf16 %v1278_v29, %v1276_v51  ;;  %v1336_v63 = vpop.xlane.xlu1 %1335  ;;  %v2329_v29 = vrot.slane %v1725_v56, %v3396_v26 }
 0x32d   :  { %v1802_v15 = vsel %vm1801_vm8, %v1800_v58, %v3652_v3  ;;  %v1637_v27 = vunpack.c.l.b16 %v1495_v8  ;;  %v1638_v37 = vunpack.c.h.b16 %v1495_v8  ;;  %1417 = vadd.xlane.f32.xlu0 %v1194_v19  ;;  %v1090_v3 = vmax.f32 %v962_v10, 0.0 }
 0x32e   :  { %v3780_v24 = vsel %vm1808_vm9, %v1807_v36, %v1802_v15  ;;  %1475 = vadd.xlane.f32.xlu1 %v1223_v30  ;;  %v1338_v40 = vpop.xlane.xlu0 %1337 }
 0x32f   :  { %v1894_v38 = vrot.slane %v1637_v27, %v3759_v7  ;;  %v1899_v25 = vrot.slane %v1638_v37, %v3762_v9  ;;  %v1510_v39 = vpack.c.bf16 %v1338_v40, %v1336_v63  ;;  %v1396_v21 = vpop.xlane.xlu1 %1395  ;;  %v1225_v6 = vmul.f32 %v3462_v62, %v1090_v3 }
 0x330   :  { %v1810_v3 = vadd.s32 4294967216, %v3382_v54 }
 0x331   :  { %v1895_v14 = vsel %vm1801_vm8, %v1894_v38, %v3667_v33  ;;  %v1667_v5 = vunpack.c.l.b16 %v1510_v39  ;;  %v1668_v43 = vunpack.c.h.b16 %v1510_v39  ;;  %1477 = vadd.xlane.f32.xlu0 %v1224_v11  ;;  %v1726_v33 = vunpack.c.h.b16 %v3744_v55 }
 0x332   :  { %v3790_v53 = vsel %vm1808_vm9, %v1899_v25, %v1895_v14  ;;  %1447 = vadd.xlane.f32.xlu1 %v1209_v61  ;;  %v1398_v44 = vpop.xlane.xlu0 %1397  ;;  %v1226_v55 = vmul.f32 %v3462_v62, %v1091_v32 }
 0x333   :  { %v2042_v0 = vrot.slane %v1667_v5, %v3618_v49  ;;  %v2047_v52 = vrot.slane %v1668_v43, %v3621_v23  ;;  %v1525_v51 = vpack.c.bf16 %v1398_v44, %v1396_v21  ;;  %v1456_v22 = vpop.xlane.xlu1 %1455  ;;  %v1817_v44 = vadd.s32 4294967208, %v3382_v54 }
 0x335   :  { %v2043_v46 = vsel %vm1787_vm6, %v2042_v0, %v3687_v34  ;;  %v1697_v42 = vunpack.c.l.b16 %v1525_v51  ;;  %v1698_v17 = vunpack.c.h.b16 %v1525_v51  ;;  %1449 = vadd.xlane.f32.xlu0 %v1210_v57  ;;  %v2333_v34 = vrot.slane %v1726_v33, %v3402_v47 }
 0x336   :  { %v3801_v41 = vsel %vm1794_vm7, %v2047_v52, %v2043_v46  ;;  %1479 = vadd.xlane.f32.xlu1 %v1225_v6  ;;  %v1458_v19 = vpop.xlane.xlu0 %1457  ;;  %v3837_v52 = vsub.s32 %v1810_v3, %v4128_v16  ;;  %v3842_v33 = vsub.s32 %v1817_v44, %v4128_v16 }
 0x337   :  { %v2190_v35 = vrot.slane %v1697_v42, %v3507_v50  ;;  %v2195_v12 = vrot.slane %v1698_v17, %v3510_v45  ;;  %v1540_v18 = vpack.c.bf16 %v1458_v19, %v1456_v22  ;;  %v1308_v48 = vpop.xlane.xlu1 %1307  ;;  %v2334_v26 = vsel %vm1752_vm1, %v2333_v34, %v2329_v29 }
 0x338   :  { %vm2407_vm1 = vcmask 1042434  }
 0x339   :  { %v2191_v58 = vsel %vm1773_vm4, %v2190_v35, %v3701_v13  ;;  %v1727_v36 = vunpack.c.l.b16 %v1540_v18  ;;  %v1728_v8 = vunpack.c.h.b16 %v1540_v18  ;;  %1481 = vadd.xlane.f32.xlu0 %v1226_v55 }
 0x33a   :  { %v3811_v63 = vsel %vm1780_vm5, %v2195_v12, %v2191_v58  ;;  %v1310_v31 = vpop.xlane.xlu0 %1309 }
 0x33b   :  { %v2338_v10 = vrot.slane %v1727_v36, %v3415_v1  ;;  %v2343_v30 = vrot.slane %v1728_v8, %v3418_v4  ;;  %v1503_v15 = vpack.c.bf16 %v1310_v31, %v1308_v48  ;;  %v1368_v62 = vpop.xlane.xlu1 %1367 }
 0x33d   :  { %v2339_v47 = vsel %vm1759_vm2, %v2338_v10, %v2334_v26  ;;  %v1653_v27 = vunpack.c.l.b16 %v1503_v15  ;;  %v1654_v37 = vunpack.c.h.b16 %v1503_v15  ;;  %vm2409_vm2 = vcmask 1043459  }
 0x33e   :  { %v3818_v13 = vsel %vm1766_vm3, %v2343_v30, %v2339_v47  ;;  %v1370_v20 = vpop.xlane.xlu0 %1369  ;;  %vm2411_vm3 = vcmask 1044484  }
 0x33f   :  { %v1973_v40 = vrot.slane %v1653_v27, %v3759_v7  ;;  %v1978_v11 = vrot.slane %v1654_v37, %v3762_v9  ;;  %v1518_v2 = vpack.c.bf16 %v1370_v20, %v1368_v62  ;;  %v1428_v1 = vpop.xlane.xlu1 %1427 }
 0x341   :  { %v1974_v4 = vsel %vm1801_vm8, %v1973_v40, %v3721_v28  ;;  %v1683_v38 = vunpack.c.l.b16 %v1518_v2  ;;  %v1684_v25 = vunpack.c.h.b16 %v1518_v2 }
 0x342   :  { %v3825_v39 = vsel %vm1808_vm9, %v1978_v11, %v1974_v4  ;;  %v1430_v21 = vpop.xlane.xlu0 %1429 }
 0x343   :  { %v2121_v61 = vrot.slane %v1683_v38, %v3618_v49  ;;  %v2126_v14 = vrot.slane %v1684_v25, %v3621_v23  ;;  %v1533_v5 = vpack.c.bf16 %v1430_v21, %v1428_v1  ;;  %v1248_v43 = vpop.xlane.xlu1 %1247 }
 0x345   :  { %v2122_v57 = vsel %vm1787_vm6, %v2121_v61, %v3738_v60  ;;  %v1713_v28 = vunpack.c.l.b16 %v1533_v5  ;;  %v1714_v32 = vunpack.c.h.b16 %v1533_v5 }
 0x346   :  { %v3834_v0 = vsel %vm1794_vm7, %v2126_v14, %v2122_v57  ;;  %v1250_v51 = vpop.xlane.xlu0 %1249 }
 0x347   :  { %v2269_v22 = vrot.slane %v1713_v28, %v3507_v50  ;;  %v2274_v56 = vrot.slane %v1714_v32, %v3510_v45  ;;  %v1488_v6 = vpack.c.bf16 %v1250_v51, %v1248_v43  ;;  %v1280_v46 = vpop.xlane.xlu1 %1279 }
 0x349   :  { %v2270_v60 = vsel %vm1773_vm4, %v2269_v22, %v3756_v59  ;;  %v1623_v42 = vunpack.c.l.b16 %v1488_v6  ;;  %v1624_v17 = vunpack.c.h.b16 %v1488_v6 }
 0x34a   :  { %v3847_v19 = vsel %vm1780_vm5, %v2274_v56, %v2270_v60  ;;  %v1282_v35 = vpop.xlane.xlu0 %1281 }
 0x34b   :  { %v1814_v12 = vrot.slane %v1623_v42, %v3837_v52  ;;  %v1821_v18 = vrot.slane %v1624_v17, %v3842_v33  ;;  %v1496_v48 = vpack.c.bf16 %v1282_v35, %v1280_v46  ;;  %v1340_v55 = vpop.xlane.xlu1 %1339 }
 0x34d   :  { %v1816_v29 = vsel %vm1815_vm10, %v1814_v12, %v3780_v24  ;;  %v1639_v34 = vunpack.c.l.b16 %v1496_v48  ;;  %v1640_v58 = vunpack.c.h.b16 %v1496_v48 }
 0x34e   :  { %v3854_v59 = vsel %vm1822_vm11, %v1821_v18, %v1816_v29  ;;  %v1342_v36 = vpop.xlane.xlu0 %1341  ;;  %v1824_v18 = vadd.s32 4294967200, %v3382_v54 }
 0x34f   :  { %v1904_v8 = vrot.slane %v1639_v34, %v3837_v52  ;;  %v1909_v31 = vrot.slane %v1640_v58, %v3842_v33  ;;  %v1511_v10 = vpack.c.bf16 %v1342_v36, %v1340_v55  ;;  %v1400_v30 = vpop.xlane.xlu1 %1399  ;;  %v1831_v58 = vadd.s32 4294967192, %v3382_v54 }
 0x351   :  { %v1905_v15 = vsel %vm1815_vm10, %v1904_v8, %v3790_v53  ;;  %v1669_v62 = vunpack.c.l.b16 %v1511_v10  ;;  %v1670_v26 = vunpack.c.h.b16 %v1511_v10  ;;  %v3901_v10 = vsub.s32 %v1824_v18, %v4128_v16 }
 0x352   :  { %v3861_v47 = vsel %vm1822_vm11, %v1909_v31, %v1905_v15  ;;  %v1402_v24 = vpop.xlane.xlu0 %1401 }
 0x353   :  { %v2052_v27 = vrot.slane %v1669_v62, %v3759_v7  ;;  %v2057_v37 = vrot.slane %v1670_v26, %v3762_v9  ;;  %v1526_v20 = vpack.c.bf16 %v1402_v24, %v1400_v30  ;;  %v1460_v40 = vpop.xlane.xlu1 %1459  ;;  %v3906_v26 = vsub.s32 %v1831_v58, %v4128_v16 }
 0x355   :  { %v2053_v11 = vsel %vm1801_vm8, %v2052_v27, %v3801_v41  ;;  %v1699_v2 = vunpack.c.l.b16 %v1526_v20  ;;  %v1700_v1 = vunpack.c.h.b16 %v1526_v20 }
 0x356   :  { %v3868_v4 = vsel %vm1808_vm9, %v2057_v37, %v2053_v11  ;;  %v1462_v53 = vpop.xlane.xlu0 %1461 }
 0x357   :  { %v2200_v38 = vrot.slane %v1699_v2, %v3618_v49  ;;  %v2205_v25 = vrot.slane %v1700_v1, %v3621_v23  ;;  %v1541_v21 = vpack.c.bf16 %v1462_v53, %v1460_v40  ;;  %v1312_v3 = vpop.xlane.xlu1 %1311 }
 0x359   :  { %v2201_v61 = vsel %vm1787_vm6, %v2200_v38, %v3811_v63  ;;  %v1729_v14 = vunpack.c.l.b16 %v1541_v21  ;;  %v1730_v5 = vunpack.c.h.b16 %v1541_v21 }
 0x35a   :  { %v3875_v43 = vsel %vm1794_vm7, %v2205_v25, %v2201_v61  ;;  %v1314_v41 = vpop.xlane.xlu0 %1313 }
 0x35b   :  { %v2348_v44 = vrot.slane %v1729_v14, %v3507_v50  ;;  %v2353_v57 = vrot.slane %v1730_v5, %v3510_v45  ;;  %v1504_v28 = vpack.c.bf16 %v1314_v41, %v1312_v3  ;;  %v1372_v32 = vpop.xlane.xlu1 %1371 }
 0x35d   :  { %v2349_v51 = vsel %vm1773_vm4, %v2348_v44, %v3818_v13  ;;  %v1655_v22 = vunpack.c.l.b16 %v1504_v28  ;;  %v1656_v56 = vunpack.c.h.b16 %v1504_v28  ;;  %vm2413_vm4 = vcmask 1045509  }
 0x35e   :  { %v3882_v6 = vsel %vm1780_vm5, %v2353_v57, %v2349_v51  ;;  %v1374_v63 = vpop.xlane.xlu0 %1373  ;;  %vm2415_vm5 = vcmask 1046534  }
 0x35f   :  { %v1983_v46 = vrot.slane %v1655_v22, %v3837_v52  ;;  %v1988_v60 = vrot.slane %v1656_v56, %v3842_v33  ;;  %v1519_v42 = vpack.c.bf16 %v1374_v63, %v1372_v32  ;;  %v1432_v17 = vpop.xlane.xlu1 %1431 }
 0x361   :  { %v1984_v50 = vsel %vm1815_vm10, %v1983_v46, %v3825_v39  ;;  %v1685_v45 = vunpack.c.l.b16 %v1519_v42  ;;  %v1686_v35 = vunpack.c.h.b16 %v1519_v42 }
 0x362   :  { %v3889_v12 = vsel %vm1822_vm11, %v1988_v60, %v1984_v50  ;;  %v1434_v13 = vpop.xlane.xlu0 %1433 }
 0x363   :  { %v2131_v48 = vrot.slane %v1685_v45, %v3759_v7  ;;  %v2136_v55 = vrot.slane %v1686_v35, %v3762_v9  ;;  %v1534_v29 = vpack.c.bf16 %v1434_v13, %v1432_v17  ;;  %v1252_v34 = vpop.xlane.xlu1 %1251 }
 0x365   :  { %v2132_v36 = vsel %vm1801_vm8, %v2131_v48, %v3834_v0  ;;  %v1715_v39 = vunpack.c.l.b16 %v1534_v29  ;;  %v1716_v8 = vunpack.c.h.b16 %v1534_v29 }
 0x366   :  { %v3898_v31 = vsel %vm1808_vm9, %v2136_v55, %v2132_v36  ;;  %v1254_v30 = vpop.xlane.xlu0 %1253 }
 0x367   :  { %v2279_v15 = vrot.slane %v1715_v39, %v3618_v49  ;;  %v2284_v62 = vrot.slane %v1716_v8, %v3621_v23  ;;  %v1489_v24 = vpack.c.bf16 %v1254_v30, %v1252_v34  ;;  %v1284_v27 = vpop.xlane.xlu1 %1283 }
 0x369   :  { %v2280_v0 = vsel %vm1787_vm6, %v2279_v15, %v3847_v19  ;;  %v1625_v37 = vunpack.c.l.b16 %v1489_v24  ;;  %v1626_v20 = vunpack.c.h.b16 %v1489_v24 }
 0x36a   :  { %v3911_v40 = vsel %vm1794_vm7, %v2284_v62, %v2280_v0  ;;  %v1286_v11 = vpop.xlane.xlu0 %1285 }
 0x36b   :  { %v1828_v2 = vrot.slane %v1625_v37, %v3901_v10  ;;  %v1835_v1 = vrot.slane %v1626_v20, %v3906_v26  ;;  %v1497_v53 = vpack.c.bf16 %v1286_v11, %v1284_v27  ;;  %v1344_v38 = vpop.xlane.xlu1 %1343 }
 0x36d   :  { %v1830_v25 = vsel %vm1829_vm12, %v1828_v2, %v3854_v59  ;;  %v1641_v21 = vunpack.c.l.b16 %v1497_v53  ;;  %v1642_v3 = vunpack.c.h.b16 %v1497_v53 }
 0x36e   :  { %v3918_v19 = vsel %vm1836_vm13, %v1835_v1, %v1830_v25  ;;  %v1346_v61 = vpop.xlane.xlu0 %1345  ;;  %v1838_v25 = vadd.s32 4294967184, %v3382_v54 }
 0x36f   :  { %v1914_v14 = vrot.slane %v1641_v21, %v3901_v10  ;;  %v1919_v5 = vrot.slane %v1642_v3, %v3906_v26  ;;  %v1512_v41 = vpack.c.bf16 %v1346_v61, %v1344_v38  ;;  %v1404_v44 = vpop.xlane.xlu1 %1403 }
 0x371   :  { %v1915_v57 = vsel %vm1829_vm12, %v1914_v14, %v3861_v47  ;;  %v1671_v28 = vunpack.c.l.b16 %v1512_v41  ;;  %v1672_v32 = vunpack.c.h.b16 %v1512_v41  ;;  %v3967_v14 = vsub.s32 %v1838_v25, %v4128_v16 }
 0x372   :  { %v3925_v51 = vsel %vm1836_vm13, %v1919_v5, %v1915_v57  ;;  %v1406_v59 = vpop.xlane.xlu0 %1405 }
 0x373   :  { %v2062_v22 = vrot.slane %v1671_v28, %v3837_v52  ;;  %v2067_v56 = vrot.slane %v1672_v32, %v3842_v33  ;;  %v1527_v63 = vpack.c.bf16 %v1406_v59, %v1404_v44  ;;  %v1464_v46 = vpop.xlane.xlu1 %1463 }
 0x375   :  { %v2063_v60 = vsel %vm1815_vm10, %v2062_v22, %v3868_v4  ;;  %v1701_v42 = vunpack.c.l.b16 %v1527_v63  ;;  %v1702_v17 = vunpack.c.h.b16 %v1527_v63 }
 0x376   :  { %v3932_v50 = vsel %vm1822_vm11, %v2067_v56, %v2063_v60  ;;  %v1466_v47 = vpop.xlane.xlu0 %1465 }
 0x377   :  { %v2210_v45 = vrot.slane %v1701_v42, %v3759_v7  ;;  %v2215_v35 = vrot.slane %v1702_v17, %v3762_v9  ;;  %v1542_v13 = vpack.c.bf16 %v1466_v47, %v1464_v46  ;;  %v1316_v18 = vpop.xlane.xlu1 %1315 }
 0x379   :  { %v2211_v48 = vsel %vm1801_vm8, %v2210_v45, %v3875_v43  ;;  %v1731_v55 = vunpack.c.l.b16 %v1542_v13  ;;  %v1732_v29 = vunpack.c.h.b16 %v1542_v13 }
 0x37a   :  { %v3939_v34 = vsel %vm1808_vm9, %v2215_v35, %v2211_v48  ;;  %v1318_v4 = vpop.xlane.xlu0 %1317 }
 0x37b   :  { %v2358_v58 = vrot.slane %v1731_v55, %v3618_v49  ;;  %v2363_v36 = vrot.slane %v1732_v29, %v3621_v23  ;;  %v1505_v39 = vpack.c.bf16 %v1318_v4, %v1316_v18  ;;  %v1376_v8 = vpop.xlane.xlu1 %1375 }
 0x37d   :  { %v2359_v30 = vsel %vm1787_vm6, %v2358_v58, %v3882_v6  ;;  %v1657_v15 = vunpack.c.l.b16 %v1505_v39  ;;  %v1658_v62 = vunpack.c.h.b16 %v1505_v39  ;;  %vm2417_vm6 = vcmask 1047559  }
 0x37e   :  { %v3946_v24 = vsel %vm1794_vm7, %v2363_v36, %v2359_v30  ;;  %v1378_v43 = vpop.xlane.xlu0 %1377 }
 0x37f   :  { %v1993_v27 = vrot.slane %v1657_v15, %v3901_v10  ;;  %v1998_v0 = vrot.slane %v1658_v62, %v3906_v26  ;;  %v1520_v37 = vpack.c.bf16 %v1378_v43, %v1376_v8  ;;  %v3950_v20 = vpop.xlane.xlu1 %1435 }
 0x381   :  { %v1994_v49 = vsel %vm1829_vm12, %v1993_v27, %v3889_v12  ;;  %v1687_v23 = vunpack.c.l.b16 %v1520_v37  ;;  %v1688_v11 = vunpack.c.h.b16 %v1520_v37  ;;  %v1845_v12 = vadd.s32 4294967176, %v3382_v54 }
 0x382   :  { %v1999_v6 = vsel %vm1836_vm13, %v1998_v0, %v1994_v49  ;;  %v3955_v2 = vpop.xlane.xlu0 %1437 }
 0x383   :  { %v2141_v1 = vrot.slane %v1687_v23, %v3837_v52  ;;  %v2146_v53 = vrot.slane %v1688_v11, %v3842_v33  ;;  %v1256_v38 = vpop.xlane.xlu1 %1255  ;;  %v3970_v57 = vsub.s32 %v1845_v12, %v4128_v16 }
 0x385   :  { %v2142_v21 = vsel %vm1815_vm10, %v2141_v1, %v3898_v31 }
 0x386   :  { %v3963_v3 = vsel %vm1822_vm11, %v2146_v53, %v2142_v21  ;;  %v1258_v61 = vpop.xlane.xlu0 %1257 }
 0x387   :  { %v1490_v5 = vpack.c.bf16 %v1258_v61, %v1256_v38  ;;  %v1288_v41 = vpop.xlane.xlu1 %1287 }
 0x389   :  { %v1627_v44 = vunpack.c.l.b16 %v1490_v5  ;;  %v1628_v28 = vunpack.c.h.b16 %v1490_v5 }
 0x38a   :  { %v1290_v32 = vpop.xlane.xlu0 %1289 }
 0x38b   :  { %v1842_v59 = vrot.slane %v1627_v44, %v3967_v14  ;;  %v1498_v31 = vpack.c.bf16 %v1290_v32, %v1288_v41  ;;  %v1348_v22 = vpop.xlane.xlu1 %1347  ;;  %v1849_v54 = vrot.slane %v1628_v28, %v3970_v57 }
 0x38d   :  { %v1643_v56 = vunpack.c.l.b16 %v1498_v31  ;;  %v1644_v63 = vunpack.c.h.b16 %v1498_v31  ;;  %v1844_v60 = vsel %vm1843_vm14, %v1842_v59, %v3918_v19 }
 0x38e   :  { %v1350_v46 = vpop.xlane.xlu0 %1349  ;;  %v1851_v45 = vsel %vm1850_vm15, %v1849_v54, %v1844_v60 }
 0x38f   :  { %v1924_v42 = vrot.slane %v1643_v56, %v3967_v14  ;;  %v1929_v16 = vrot.slane %v1644_v63, %v3970_v57  ;;  %v1408_v17 = vpop.xlane.xlu1 %1407  ;;  %v1513_v36 = vpack.c.bf16 %v1350_v46, %v1348_v22  ;;  %v1535_v63 = vpack.c.bf16 %v3955_v2, %v3950_v20 }
 0x391   :  { %v1925_v47 = vsel %vm1843_vm14, %v1924_v42, %v3925_v51  ;;  %v1673_v43 = vunpack.c.l.b16 %v1513_v36  ;;  %v1674_v11 = vunpack.c.h.b16 %v1513_v36 }
 0x392   :  { %v1930_v35 = vsel %vm1850_vm15, %v1929_v16, %v1925_v47  ;;  %v1410_v13 = vpop.xlane.xlu0 %1409 }
 0x393   :  { %v2406_v18 = vsel %vm2405_vm0, %v1930_v35, %v1851_v45  ;;  %v1468_v48 = vpop.xlane.xlu1 %1467  ;;  %v2072_v1 = vrot.slane %v1673_v43, %v3901_v10  ;;  %v2077_v21 = vrot.slane %v1674_v11, %v3906_v26  ;;  %v1528_v31 = vpack.c.bf16 %v1410_v13, %v1408_v17 }
 0x394   :  { %v1717_v35 = vunpack.c.l.b16 %v1535_v63  ;;  %v1718_v13 = vunpack.c.h.b16 %v1535_v63 }
 0x395   :  { %v2073_v12 = vsel %vm1829_vm12, %v2072_v1, %v3932_v50  ;;  %v1703_v42 = vunpack.c.l.b16 %v1528_v31 }
 0x396   :  { %v1470_v55 = vpop.xlane.xlu0 %1469  ;;  %v2078_v59 = vsel %vm1836_vm13, %v2077_v21, %v2073_v12 }
 0x397   :  { %v1320_v29 = vpop.xlane.xlu1 %1319  ;;  %v2220_v20 = vrot.slane %v1703_v42, %v3837_v52 }
 0x399   :  { %v2221_v11 = vsel %vm1815_vm10, %v2220_v20, %v3939_v34 }
 0x39a   :  { %v1322_v4 = vpop.xlane.xlu0 %1321 }
 0x39b   :  { %v1506_v19 = vpack.c.bf16 %v1322_v4, %v1320_v29  ;;  %v1380_v58 = vpop.xlane.xlu1 %1379 }
 0x39d   :  { %v1659_v39 = vunpack.c.l.b16 %v1506_v19  ;;  %v1660_v8 = vunpack.c.h.b16 %v1506_v19 }
 0x39e   :  { %v1382_v30 = vpop.xlane.xlu0 %1381 }
 0x39f   :  { %v2003_v15 = vrot.slane %v1659_v39, %v3967_v14  ;;  %v2008_v51 = vrot.slane %v1660_v8, %v3970_v57  ;;  %v1440_v62 = vpop.xlane.xlu1 %1439  ;;  %v1521_v61 = vpack.c.bf16 %v1382_v30, %v1380_v58  ;;  %v1704_v58 = vunpack.c.h.b16 %v1528_v31 }
 0x3a1   :  { %v2004_v27 = vsel %vm1843_vm14, %v2003_v15, %v1999_v6  ;;  %v1689_v22 = vunpack.c.l.b16 %v1521_v61  ;;  %v1690_v16 = vunpack.c.h.b16 %v1521_v61  ;;  %v2289_v15 = vrot.slane %v1717_v35, %v3759_v7 }
 0x3a2   :  { %v2009_v0 = vsel %vm1850_vm15, %v2008_v51, %v2004_v27  ;;  %v1442_v37 = vpop.xlane.xlu0 %1441 }
 0x3a3   :  { %v2408_v49 = vsel %vm2407_vm1, %v2009_v0, %v2406_v18  ;;  %v1352_v23 = vpop.xlane.xlu1 %1351  ;;  %v2151_v47 = vrot.slane %v1689_v22, %v3901_v10  ;;  %v1543_v18 = vpack.c.bf16 %v1470_v55, %v1468_v48  ;;  %v1536_v29 = vpack.c.bf16 %v1442_v37, %v1440_v62 }
 0x3a4   :  { %v2156_v2 = vrot.slane %v1690_v16, %v3906_v26  ;;  %v2294_v55 = vrot.slane %v1718_v13, %v3762_v9  ;;  %v2225_v37 = vrot.slane %v1704_v58, %v3842_v33 }
 0x3a5   :  { %v2152_v36 = vsel %vm1829_vm12, %v2151_v47, %v3963_v3  ;;  %v1733_v51 = vunpack.c.l.b16 %v1543_v18  ;;  %v1719_v62 = vunpack.c.l.b16 %v1536_v29  ;;  %v1720_v12 = vunpack.c.h.b16 %v1536_v29 }
 0x3a6   :  { %v1354_v53 = vpop.xlane.xlu0 %1353  ;;  %v2157_v3 = vsel %vm1836_vm13, %v2156_v2, %v2152_v36 }
 0x3a7   :  { %v1514_v38 = vpack.c.bf16 %v1354_v53, %v1352_v23  ;;  %v1412_v25 = vpop.xlane.xlu1 %1411  ;;  %v2368_v21 = vrot.slane %v1733_v51, %v3759_v7 }
 0x3a9   :  { %v1675_v5 = vunpack.c.l.b16 %v1514_v38  ;;  %v1676_v41 = vunpack.c.h.b16 %v1514_v38 }
 0x3aa   :  { %v1414_v6 = vpop.xlane.xlu0 %1413 }
 0x3ab   :  { %v2082_v44 = vrot.slane %v1675_v5, %v3967_v14  ;;  %v2087_v28 = vrot.slane %v1676_v41, %v3970_v57  ;;  %v1472_v32 = vpop.xlane.xlu1 %1471  ;;  %v1529_v45 = vpack.c.bf16 %v1414_v6, %v1412_v25  ;;  %v1734_v25 = vunpack.c.h.b16 %v1543_v18 }
 0x3ac   :  { %v2290_v41 = vsel %vm1801_vm8, %v2289_v15, %v3911_v40  ;;  %v2299_v6 = vrot.slane %v1719_v62, %v3837_v52  ;;  %v2369_v40 = vsel %vm1801_vm8, %v2368_v21, %v3946_v24 }
 0x3ad   :  { %v2083_v56 = vsel %vm1843_vm14, %v2082_v44, %v2078_v59  ;;  %v1705_v39 = vunpack.c.l.b16 %v1529_v45 }
 0x3ae   :  { %v2088_v50 = vsel %vm1850_vm15, %v2087_v28, %v2083_v56  ;;  %v1474_v54 = vpop.xlane.xlu0 %1473 }
 0x3af   :  { %v2410_v46 = vsel %vm2409_vm2, %v2088_v50, %v2408_v49  ;;  %v1384_v60 = vpop.xlane.xlu1 %1383  ;;  %v1706_v49 = vunpack.c.h.b16 %v1529_v45  ;;  %v1544_v23 = vpack.c.bf16 %v1474_v54, %v1472_v32  ;;  %v2230_v1 = vrot.slane %v1705_v39, %v3901_v10 }
 0x3b0   :  { %v2226_v32 = vsel %vm1822_vm11, %v2225_v37, %v2221_v11  ;;  %v2295_v50 = vsel %vm1808_vm9, %v2294_v55, %v2290_v41  ;;  %v2373_v54 = vrot.slane %v1734_v25, %v3762_v9 }
 0x3b1   :  { %v2235_v59 = vrot.slane %v1706_v49, %v3906_v26  ;;  %v1735_v31 = vunpack.c.l.b16 %v1544_v23  ;;  %v2231_v7 = vsel %vm1829_vm12, %v2230_v1, %v2226_v32  ;;  %v2300_v42 = vsel %vm1815_vm10, %v2299_v6, %v2295_v50 }
 0x3b2   :  { %v1386_v17 = vpop.xlane.xlu0 %1385  ;;  %v1736_v18 = vunpack.c.h.b16 %v1544_v23  ;;  %v2374_v20 = vsel %vm1808_vm9, %v2373_v54, %v2369_v40 }
 0x3b3   :  { %v1522_v4 = vpack.c.bf16 %v1386_v17, %v1384_v60  ;;  %v1444_v19 = vpop.xlane.xlu1 %1443  ;;  %v2236_v35 = vsel %vm1836_vm13, %v2235_v59, %v2231_v7  ;;  %v2378_v17 = vrot.slane %v1735_v31, %v3837_v52 }
 0x3b4   :  { %v2383_v52 = vrot.slane %v1736_v18, %v3842_v33 }
 0x3b5   :  { %v1691_v8 = vunpack.c.l.b16 %v1522_v4  ;;  %v1692_v30 = vunpack.c.h.b16 %v1522_v4 }
 0x3b6   :  { %v1446_v48 = vpop.xlane.xlu0 %1445 }
 0x3b7   :  { %v2161_v43 = vrot.slane %v1691_v8, %v3967_v14  ;;  %v2166_v27 = vrot.slane %v1692_v30, %v3970_v57  ;;  %v1416_v0 = vpop.xlane.xlu1 %1415  ;;  %v1537_v38 = vpack.c.bf16 %v1446_v48, %v1444_v19  ;;  %v2379_v8 = vsel %vm1815_vm10, %v2378_v17, %v2374_v20 }
 0x3b8   :  { %v2384_v49 = vsel %vm1822_vm11, %v2383_v52, %v2379_v8 }
 0x3b9   :  { %v2162_v53 = vsel %vm1843_vm14, %v2161_v43, %v2157_v3  ;;  %v1721_v22 = vunpack.c.l.b16 %v1537_v38  ;;  %v1722_v13 = vunpack.c.h.b16 %v1537_v38 }
 0x3ba   :  { %v2167_v61 = vsel %vm1850_vm15, %v2166_v27, %v2162_v53  ;;  %v1418_v5 = vpop.xlane.xlu0 %1417 }
 0x3bb   :  { %v1530_v44 = vpack.c.bf16 %v1418_v5, %v1416_v0  ;;  %v1476_v28 = vpop.xlane.xlu1 %1475  ;;  %v2412_v34 = vsel %vm2411_vm3, %v2167_v61, %v2410_v46  ;;  %v2304_v46 = vrot.slane %v1720_v12, %v3842_v33  ;;  %v2309_v24 = vrot.slane %v1721_v22, %v3901_v10 }
 0x3bc   :  { %v2314_v30 = vrot.slane %v1722_v13, %v3906_v26 }
 0x3bd   :  { %v1707_v56 = vunpack.c.l.b16 %v1530_v44  ;;  %v1708_v63 = vunpack.c.h.b16 %v1530_v44  ;;  %v2305_v2 = vsel %vm1822_vm11, %v2304_v46, %v2300_v42  ;;  %v1548_v44 = vstv %s4075_s5 }
 0x3be   :  { %v1478_v60 = vpop.xlane.xlu0 %1477  ;;  %v2310_v51 = vsel %vm1829_vm12, %v2309_v24, %v2305_v2 }
 0x3bf   :  { %v2240_v16 = vrot.slane %v1707_v56, %v3967_v14  ;;  %v2245_v47 = vrot.slane %v1708_v63, %v3970_v57  ;;  %v1545_v45 = vpack.c.bf16 %v1478_v60, %v1476_v28  ;;  %v1448_v29 = vpop.xlane.xlu1 %1447  ;;  %v2315_v33 = vsel %vm1836_vm13, %v2314_v30, %v2310_v51 }
 0x3c1   :  { %v2241_v9 = vsel %vm1843_vm14, %v2240_v16, %v2236_v35  ;;  %v1737_v4 = vunpack.c.l.b16 %v1545_v45  ;;  %v1738_v15 = vunpack.c.h.b16 %v1545_v45 }
 0x3c2   :  { %v2246_v19 = vsel %vm1850_vm15, %v2245_v47, %v2241_v9  ;;  %v1450_v58 = vpop.xlane.xlu0 %1449 }
 0x3c3   :  { %v1538_v36 = vpack.c.bf16 %v1450_v58, %v1448_v29  ;;  %v2414_v39 = vsel %vm2413_vm4, %v2246_v19, %v2412_v34  ;;  %v2388_v48 = vrot.slane %v1737_v4, %v3901_v10  ;;  %v1480_v43 = vpop.xlane.xlu1 %1479  ;;  %v2393_v23 = vrot.slane %v1738_v15, %v3906_v26 }
 0x3c5   :  { %v1723_v55 = vunpack.c.l.b16 %v1538_v36  ;;  %v1724_v62 = vunpack.c.h.b16 %v1538_v36  ;;  %v2389_v11 = vsel %vm1829_vm12, %v2388_v48, %v2384_v49 }
 0x3c6   :  { %v1482_v27 = vpop.xlane.xlu0 %1481  ;;  %v2394_v61 = vsel %vm1836_vm13, %v2393_v23, %v2389_v11 }
 0x3c7   :  { %v2319_v0 = vrot.slane %v1723_v55, %v3967_v14  ;;  %v2324_v37 = vrot.slane %v1724_v62, %v3970_v57  ;;  %v1546_v3 = vpack.c.bf16 %v1482_v27, %v1480_v43 }
 0x3c9   :  { %v2320_v10 = vsel %vm1843_vm14, %v2319_v0, %v2315_v33  ;;  %v1739_v1 = vunpack.c.l.b16 %v1546_v3  ;;  %v1740_v53 = vunpack.c.h.b16 %v1546_v3 }
 0x3ca   :  { %v2325_v38 = vsel %vm1850_vm15, %v2324_v37, %v2320_v10 }
 0x3cb   :  { %v2398_v25 = vrot.slane %v1739_v1, %v3967_v14  ;;  %v2403_v21 = vrot.slane %v1740_v53, %v3970_v57  ;;  %v2416_v12 = vsel %vm2415_vm5, %v2325_v38, %v2414_v39 }
 0x3cd   :  { %v2399_v5 = vsel %vm1843_vm14, %v2398_v25, %v2394_v61 }
 0x3ce   :  { %v2404_v26 = vsel %vm1850_vm15, %v2403_v21, %v2399_v5 }
 0x3cf   :  { %v2418_v41 = vsel %vm2417_vm6, %v2404_v26, %v2416_v12 }
 0x3d0   :  { %v2419_v6 = vpack.c.b16 %v2418_v41, %v2418_v41 }
 0x3d2   :  { %2544 = vmatmul.mubr.bf16.vlgmr.msra.gmra.mrb[0].mxu1 %v2419_v6 }
 0x4a5   :  { %v2455_v14 = vpop.f32.mrb[0].mxu1 }
 0x4a6   :  { %v2456_v28 = vadd.f32 %v2455_v14, %v1548_v44  ;;  %v2545_v57 = vpop.f32.mrb[1].mxu1 }
 0x4a7   :  { %v2458_v34 = vpop.f32.mrb[2].mxu1 }
 0x4a8   :  { %2461 = vst [vmem:[#allocation8] sm:$0xff] %v2456_v28  ;;  %v2546_v32 = vpop.f32.mrb[3].mxu1 }
 0x4a9   :  { %2620 = shalt.err (!%p2617_p6)
}
 0x4aa   :  { %s2621_s5 = scalar_lea.hbm %s4076_s6, 128 }
 0x4ab   :  { %p2622_p7 = scmp.ne.s32.totalorder %s4076_s6, %s2621_s5  ;;  %p2625_p8 = scmp.lt.u32.totalorder %s2621_s5, %s4076_s6 }
 0x4ad   :  { %p2627_p9 = pnand %p2625_p8, %p2622_p7 }
 0x4af   :  { %2630 = shalt.err (!%p2627_p9)
}
 0x4b0   :  { %2471 = dma.vmem_to_hbm [thread:$0]  %s2469_s9, 128, %s4076_s6, [#allocation5]  }
 0x4b1   :  { %2635 = dma.done.wait [#allocation5], 128  }
 0x4b2   :  { %2636 = vsyncadd [#allocation5], 4294967168 }
 0x4b3   :  { %2475 = vsyncpa [#allocation4], 1 }
 0x4b4   :  { %2476 = vsyncpa [#allocation7], 1 }
 0x4b5   :  { %2477 = vsyncpa [#allocation5], 1 }

</bundles_post_ra>
